<compile_context>
chip_gen: v6e
topology: v6e:2x2x1
jax: 0.10.0
libtpu: 0.0.40
codegen_flags: <defaults>
</compile_context>

<pallas_src>
import functools
import math

import jax
import jax.numpy as jnp
from jax.experimental import pallas as pl
from jax.experimental.pallas import tpu as pltpu


_LAYER_PARAM_ORDER = ("wq", "bq", "wk", "bk", "wv", "bv", "wo", "bo",
                      "w1", "b1", "w2", "b2", "g1", "beta1", "g2", "beta2")


# ----------------------------- Pallas kernels -----------------------------

def encoder_layer_kernel(num_heads, head_dim, eps, fuse_final_ln, q_tile,
                         ff_tile, *refs):
    """One post-norm transformer encoder layer for a single batch element.

    If `fuse_final_ln`, the TextEncoder's final LayerNorm is applied before the
    store (used for the last layer only).
    """
    if fuse_final_ln:
        (x_ref, wq_ref, bq_ref, wk_ref, bk_ref, wv_ref, bv_ref, wo_ref, bo_ref,
         w1_ref, b1_ref, w2_ref, b2_ref, g1_ref, beta1_ref, g2_ref, beta2_ref,
         gf_ref, bf_ref, o_ref) = refs
    else:
        (x_ref, wq_ref, bq_ref, wk_ref, bk_ref, wv_ref, bv_ref, wo_ref, bo_ref,
         w1_ref, b1_ref, w2_ref, b2_ref, g1_ref, beta1_ref, g2_ref, beta2_ref,
         o_ref) = refs
        gf_ref = bf_ref = None

    x = x_ref[0].astype(jnp.float32)            # (S, E) f32 residual stream
    S, E = x.shape
    H, hd = num_heads, head_dim
    F = w1_ref.shape[1]
    scale = 1.0 / math.sqrt(hd)

    def matmul(a_f32, w_bf16, b_f32):
        # bf16 MXU operands (weights stored natively in bf16), f32 accumulation;
        # bias add stays on the f32 VPU path.
        return (jnp.dot(a_f32.astype(jnp.bfloat16), w_bf16,
                        preferred_element_type=jnp.float32)
                + b_f32.astype(jnp.float32))

    def layernorm(a, g_ref, b_ref):
        mu = jnp.mean(a, axis=-1, keepdims=True)
        var = jnp.mean((a - mu) ** 2, axis=-1, keepdims=True)
        return ((a - mu) * jax.lax.rsqrt(var + eps)
                * g_ref[...].astype(jnp.float32) + b_ref[...].astype(jnp.float32))

    # ---- K/V projections once for the whole sequence (never recomputed) ----
    k = matmul(x, wk_ref[...], bk_ref[...])
    v = matmul(x, wv_ref[...], bv_ref[...])
    k3 = k.reshape(S, H, hd).astype(jnp.bfloat16)
    v3 = v.reshape(S, H, hd).astype(jnp.bfloat16)

    # ---- Query-tiled attention + FFN: bounds VMEM live ranges ----
    for q0 in range(0, S, q_tile):
        tq = min(q_tile, S - q0)
        xq = jax.lax.slice_in_dim(x, q0, q0 + tq, axis=0)         # (TQ, E)

        # scale folded into q (bias included — mathematically identical)
        q = matmul(xq, wq_ref[...], bq_ref[...]) * scale
        q3 = q.reshape(tq, H, hd).astype(jnp.bfloat16)

        s = jnp.einsum("qhd,khd->hqk", q3, k3,
                       preferred_element_type=jnp.float32)        # (H, TQ, S)
        s = s - jnp.max(s, axis=-1, keepdims=True)                # stable softmax
        p = jnp.exp(s)
        p = p * pl.reciprocal(jnp.sum(p, axis=-1, keepdims=True), approx=True)

        ctx = jnp.einsum("hqk,khd->qhd", p.astype(jnp.bfloat16), v3,
                         preferred_element_type=jnp.float32)      # (TQ, H, hd)
        attn_out = matmul(ctx.reshape(tq, E), wo_ref[...], bo_ref[...])

        # residual + norm1
        x1 = layernorm(xq + attn_out, g1_ref, beta1_ref)
        x1_bf = x1.astype(jnp.bfloat16)

        # ---- Feed-forward, tiled over ff_dim with f32 accumulator ----
        ffn = jnp.zeros((tq, E), jnp.float32)
        for f0 in range(0, F, ff_tile):
            tf = min(ff_tile, F - f0)
            h = jnp.maximum(
                jnp.dot(x1_bf, w1_ref[:, f0:f0 + tf],
                        preferred_element_type=jnp.float32)
                + b1_ref[:, f0:f0 + tf].astype(jnp.float32), 0.0)  # (TQ, tf)
            ffn = ffn + jnp.dot(h.astype(jnp.bfloat16), w2_ref[f0:f0 + tf, :],
                                preferred_element_type=jnp.float32)
        ffn = ffn + b2_ref[...].astype(jnp.float32)

        # residual + norm2
        x2 = layernorm(x1 + ffn, g2_ref, beta2_ref)

        if fuse_final_ln:                                         # fused final LN
            x2 = layernorm(x2, gf_ref, bf_ref)

        o_ref[0, q0:q0 + tq, :] = x2.astype(o_ref.dtype)


def layernorm_kernel(eps, x_ref, g_ref, b_ref, o_ref):
    # Standalone final LayerNorm — only used in the degenerate zero-layer case;
    # otherwise the final LN is fused into the last encoder-layer kernel.
    x = x_ref[0].astype(jnp.float32)
    mu = jnp.mean(x, axis=-1, keepdims=True)
    var = jnp.mean((x - mu) ** 2, axis=-1, keepdims=True)
    o_ref[0] = ((x - mu) * jax.lax.rsqrt(var + eps)
                * g_ref[...].astype(jnp.float32)
                + b_ref[...].astype(jnp.float32)).astype(o_ref.dtype)


# ----------------------------- Python wrappers -----------------------------

def _invariant_spec(shape):
    """BlockSpec for a grid-invariant (weight/bias/LN) operand.

    Buffered(1): don't waste VMEM double-buffering data whose index_map is
    constant across the grid. Gracefully falls back if this JAX build does not
    accept pipeline_mode on BlockSpec.
    """
    n = len(shape)
    index_map = lambda b, _n=n: (0,) * _n
    try:
        return pl.BlockSpec(shape, index_map, pipeline_mode=pl.Buffered(1))
    except (TypeError, AttributeError):
        return pl.BlockSpec(shape, index_map)


def _itemsize(dtype):
    return jax.dtypes.canonicalize_dtype(dtype).itemsize


def transformer_layer(x, params, num_heads, eps=1e-5, final_ln=None,
                      out_dtype=jnp.bfloat16):
    """One TransformerEncoderLayer; optionally fuses the encoder's final LayerNorm."""
    B, S, E = x.shape
    F = params["w1"].shape[1]
    head_dim = E // num_heads
    fuse = final_ln is not None

    # Query tile bounds the (H, TQ, S) score tensor; ff tile bounds the ReLU
    # intermediate. Degenerate to the full extent at small demo shapes.
    q_tile = 128 if S % 128 == 0 else S
    ff_tile = 512 if F % 512 == 0 else F

    kernel = functools.partial(encoder_layer_kernel, num_heads, head_dim, eps,
                               fuse, q_tile, ff_tile)

    args = [x]
    in_specs = [pl.BlockSpec((1, S, E), lambda b: (b, 0, 0))]
    for name in _LAYER_PARAM_ORDER:
        p = params[name]
        args.append(p)
        in_specs.append(_invariant_spec(p.shape))
    if fuse:
        for p in final_ln:                      # (norm_g, norm_b)
            args.append(p)
            in_specs.append(_invariant_spec(p.shape))

    # Advisory cost estimate so XLA schedules surrounding ops correctly.
    flops = int(2 * B * S * E * (4 * E + 2 * F)
                + 4 * B * num_heads * S * S * head_dim)
    transc = int(B * num_heads * S * S)
    weight_bytes = sum(int(params[n].size) * params[n].dtype.itemsize
                       for n in _LAYER_PARAM_ORDER)
    act_bytes = int(B * S * E) * (x.dtype.itemsize + _itemsize(out_dtype))
    cost = pl.CostEstimate(flops=flops, transcendentals=transc,
                           bytes_accessed=weight_bytes + act_bytes)

    return pl.pallas_call(
        kernel,
        out_shape=jax.ShapeDtypeStruct((B, S, E), out_dtype),
        grid=(B,),
        in_specs=in_specs,
        out_specs=pl.BlockSpec((1, S, E), lambda b: (b, 0, 0)),
        compiler_params=pltpu.CompilerParams(
            dimension_semantics=("parallel",),
            vmem_limit_bytes=64 * 1024 * 1024),
        cost_estimate=cost,
    )(*args)


def final_layernorm(x, gamma, beta, eps=1e-5):
    B, S, E = x.shape
    return pl.pallas_call(
        functools.partial(layernorm_kernel, eps),
        out_shape=jax.ShapeDtypeStruct((B, S, E), jnp.float32),
        grid=(B,),
        in_specs=[pl.BlockSpec((1, S, E), lambda b: (b, 0, 0)),
                  _invariant_spec(gamma.shape),
                  _invariant_spec(beta.shape)],
        out_specs=pl.BlockSpec((1, S, E), lambda b: (b, 0, 0)),
        compiler_params=pltpu.CompilerParams(
            dimension_semantics=("parallel",),
            vmem_limit_bytes=64 * 1024 * 1024),
    )(x, gamma, beta)


def text_encoder_forward(text, params, num_heads):
    # glue: embedding gather + positional embedding add (plain JAX);
    # residual stream is carried bf16 in HBM between layers.
    x = params["embed"][text]                               # (B, S, E) f32
    S = text.shape[1]
    x = (x + params["pos_embed"][:, :S, :]).astype(jnp.bfloat16)
    layers = params["layers"]
    if not layers:
        return final_layernorm(x, params["norm_g"], params["norm_b"])
    for i, lp in enumerate(layers):
        last = i == len(layers) - 1
        fin = (params["norm_g"], params["norm_b"]) if last else None
        x = transformer_layer(x, lp, num_heads, final_ln=fin,
                              out_dtype=jnp.float32 if last else jnp.bfloat16)
    return x


# ----------------------------- Parameter init -----------------------------

def init_params(key, vocab_size, embed_dim, num_layers, num_heads, ff_dim, max_seq_len):
    keys = iter(jax.random.split(key, 12 * max(num_layers, 1) + 8))

    def nrm(shape, scale=0.05, dtype=jnp.float32):
        return (scale * jax.random.normal(next(keys), shape)).astype(dtype)

    bf16 = jnp.bfloat16
    params = {
        "embed": nrm((vocab_size, embed_dim), 0.1),
        "pos_embed": nrm((1, max_seq_len, embed_dim), 0.02),
        "norm_g": jnp.ones((1, embed_dim), jnp.float32),
        "norm_b": jnp.zeros((1, embed_dim), jnp.float32),
        "layers": [],
    }
    for _ in range(num_layers):
        lp = {
            # Weight matrices stored natively in bf16 (halves DMA + VMEM);
            # biases / LN params stay f32 (negligible bytes).
            "wq": nrm((embed_dim, embed_dim), dtype=bf16), "bq": nrm((1, embed_dim)),
            "wk": nrm((embed_dim, embed_dim), dtype=bf16), "bk": nrm((1, embed_dim)),
            "wv": nrm((embed_dim, embed_dim), dtype=bf16), "bv": nrm((1, embed_dim)),
            "wo": nrm((embed_dim, embed_dim), dtype=bf16), "bo": nrm((1, embed_dim)),
            "w1": nrm((embed_dim, ff_dim), dtype=bf16),    "b1": nrm((1, ff_dim)),
            "w2": nrm((ff_dim, embed_dim), dtype=bf16),    "b2": nrm((1, embed_dim)),
            "g1": jnp.ones((1, embed_dim), jnp.float32),
            "beta1": jnp.zeros((1, embed_dim), jnp.float32),
            "g2": jnp.ones((1, embed_dim), jnp.float32),
            "beta2": jnp.zeros((1, embed_dim), jnp.float32),
        }
        params["layers"].append(lp)
    return params


# ----------------------------- Pure-JAX f32 reference -----------------------------

def _ref_ln(a, g, b, eps=1e-5):
    mu = a.mean(-1, keepdims=True)
    var = ((a - mu) ** 2).mean(-1, keepdims=True)
    return (a - mu) / jnp.sqrt(var + eps) * g + b


def ref_forward(text, params, num_heads):
    f32 = lambda a: a.astype(jnp.float32)
    x = params["embed"][text] + params["pos_embed"][:, :text.shape[1], :]
    B, S, E = x.shape
    hd = E // num_heads
    for p in params["layers"]:
        q = (x @ f32(p["wq"]) + p["bq"]).reshape(B, S, num_heads, hd).transpose(0, 2, 1, 3)
        k = (x @ f32(p["wk"]) + p["bk"]).reshape(B, S, num_heads, hd).transpose(0, 2, 1, 3)
        v = (x @ f32(p["wv"]) + p["bv"]).reshape(B, S, num_heads, hd).transpose(0, 2, 1, 3)
        scores = jnp.einsum("bhqd,bhkd->bhqk", q, k) / math.sqrt(hd)
        attn = jax.nn.softmax(scores, axis=-1)
        ctx = jnp.einsum("bhqk,bhkd->bhqd", attn, v).transpose(0, 2, 1, 3).reshape(B, S, E)
        attn_out = ctx @ f32(p["wo"]) + p["bo"]
        x = _ref_ln(x + attn_out, p["g1"], p["beta1"])
        ffn = jnp.maximum(x @ f32(p["w1"]) + p["b1"], 0.0) @ f32(p["w2"]) + p["b2"]
        x = _ref_ln(x + ffn, p["g2"], p["beta2"])
    return _ref_ln(x, params["norm_g"], params["norm_b"])


# ----------------------------- Main -----------------------------

if __name__ == "__main__":
    vocab_size = 100
    embed_dim = 32
    num_layers = 2
    num_heads = 4
    ff_dim = 64
    max_seq_len = 16
    B, S = 2, 8

    key = jax.random.PRNGKey(0)
    pkey, tkey = jax.random.split(key)
    params = init_params(pkey, vocab_size, embed_dim, num_layers, num_heads,
                         ff_dim, max_seq_len)
    text = jax.random.randint(tkey, (B, S), 0, vocab_size, dtype=jnp.int32)

    out = text_encoder_forward(text, params, num_heads)
    out = jax.block_until_ready(out)

    expected = ref_forward(text, params, num_heads)
    assert out.shape == (B, S, embed_dim)
    assert out.dtype == jnp.float32
    assert jnp.all(jnp.isfinite(out))
    # Tolerance accounts for bf16 weights / bf16 inter-layer activations
    # (f32 accumulation and f32 norm math inside the kernel) and the
    # approx-reciprocal softmax vs. the pure-f32 reference.
    assert jnp.allclose(out, expected, atol=5e-2, rtol=5e-2), (
        float(jnp.max(jnp.abs(out - expected))))

    print("KERNEL_OK")
</pallas_src>

<mosaic_0001>
module attributes {stable_mosaic.version = 11 : i64} {
  func.func @encoder_layer_kernel(%arg0: i32, %arg1: memref<1x8x32xbf16, #tpu.memory_space<vmem>>, %arg2: memref<32x32xbf16, #tpu.memory_space<vmem>>, %arg3: memref<1x32xf32, #tpu.memory_space<vmem>>, %arg4: memref<32x32xbf16, #tpu.memory_space<vmem>>, %arg5: memref<1x32xf32, #tpu.memory_space<vmem>>, %arg6: memref<32x32xbf16, #tpu.memory_space<vmem>>, %arg7: memref<1x32xf32, #tpu.memory_space<vmem>>, %arg8: memref<32x32xbf16, #tpu.memory_space<vmem>>, %arg9: memref<1x32xf32, #tpu.memory_space<vmem>>, %arg10: memref<32x64xbf16, #tpu.memory_space<vmem>>, %arg11: memref<1x64xf32, #tpu.memory_space<vmem>>, %arg12: memref<64x32xbf16, #tpu.memory_space<vmem>>, %arg13: memref<1x32xf32, #tpu.memory_space<vmem>>, %arg14: memref<1x32xf32, #tpu.memory_space<vmem>>, %arg15: memref<1x32xf32, #tpu.memory_space<vmem>>, %arg16: memref<1x32xf32, #tpu.memory_space<vmem>>, %arg17: memref<1x32xf32, #tpu.memory_space<vmem>>, %arg18: memref<1x8x32xbf16, #tpu.memory_space<vmem>>) attributes {dimension_semantics = [#tpu.dimension_semantics<parallel>], iteration_bounds = array<i64: 2>, scalar_prefetch = 0 : i64, scratch_operands = 0 : i64, tpu.core_type = #tpu.core_type<tc>, window_params = [{transform_indices = @transform_0, window_bounds = array<i64: 1, 8, 32>}, {pipeline_mode = #tpu.pipeline_mode<synchronous>, transform_indices = @transform_1, window_bounds = array<i64: 32, 32>}, {pipeline_mode = #tpu.pipeline_mode<synchronous>, transform_indices = @transform_2, window_bounds = array<i64: 1, 32>}, {pipeline_mode = #tpu.pipeline_mode<synchronous>, transform_indices = @transform_3, window_bounds = array<i64: 32, 32>}, {pipeline_mode = #tpu.pipeline_mode<synchronous>, transform_indices = @transform_4, window_bounds = array<i64: 1, 32>}, {pipeline_mode = #tpu.pipeline_mode<synchronous>, transform_indices = @transform_5, window_bounds = array<i64: 32, 32>}, {pipeline_mode = #tpu.pipeline_mode<synchronous>, transform_indices = @transform_6, window_bounds = array<i64: 1, 32>}, {pipeline_mode = #tpu.pipeline_mode<synchronous>, transform_indices = @transform_7, window_bounds = array<i64: 32, 32>}, {pipeline_mode = #tpu.pipeline_mode<synchronous>, transform_indices = @transform_8, window_bounds = array<i64: 1, 32>}, {pipeline_mode = #tpu.pipeline_mode<synchronous>, transform_indices = @transform_9, window_bounds = array<i64: 32, 64>}, {pipeline_mode = #tpu.pipeline_mode<synchronous>, transform_indices = @transform_10, window_bounds = array<i64: 1, 64>}, {pipeline_mode = #tpu.pipeline_mode<synchronous>, transform_indices = @transform_11, window_bounds = array<i64: 64, 32>}, {pipeline_mode = #tpu.pipeline_mode<synchronous>, transform_indices = @transform_12, window_bounds = array<i64: 1, 32>}, {pipeline_mode = #tpu.pipeline_mode<synchronous>, transform_indices = @transform_13, window_bounds = array<i64: 1, 32>}, {pipeline_mode = #tpu.pipeline_mode<synchronous>, transform_indices = @transform_14, window_bounds = array<i64: 1, 32>}, {pipeline_mode = #tpu.pipeline_mode<synchronous>, transform_indices = @transform_15, window_bounds = array<i64: 1, 32>}, {pipeline_mode = #tpu.pipeline_mode<synchronous>, transform_indices = @transform_16, window_bounds = array<i64: 1, 32>}, {transform_indices = @transform_17, window_bounds = array<i64: 1, 8, 32>}]} {
    %c0 = arith.constant 0 : index
    %c0_0 = arith.constant 0 : index
    %c0_1 = arith.constant 0 : index
    %0 = vector.load %arg1[%c0, %c0_0, %c0_1] : memref<1x8x32xbf16, #tpu.memory_space<vmem>>, vector<1x8x32xbf16>
    %1 = vector.shape_cast %0 : vector<1x8x32xbf16> to vector<8x32xbf16>
    %2 = arith.extf %1 : vector<8x32xbf16> to vector<8x32xf32>
    %c0_2 = arith.constant 0 : index
    %c0_3 = arith.constant 0 : index
    %3 = vector.load %arg4[%c0_2, %c0_3] : memref<32x32xbf16, #tpu.memory_space<vmem>>, vector<32x32xbf16>
    %c0_4 = arith.constant 0 : index
    %c0_5 = arith.constant 0 : index
    %4 = vector.load %arg5[%c0_4, %c0_5] : memref<1x32xf32, #tpu.memory_space<vmem>>, vector<1x32xf32>
    %5 = arith.truncf %2 : vector<8x32xf32> to vector<8x32xbf16>
    %cst = arith.constant dense<0.000000e+00> : vector<8x32xf32>
    %6 = tpu.matmul %5, %3, %cst {dimension_numbers = #tpu.dot_dimension_numbers<[1], [0], [0], [1], [0, 0, 1, 1], [], []>} : vector<8x32xbf16>, vector<32x32xbf16>, vector<8x32xf32> -> vector<8x32xf32>
    %7 = vector.broadcast %4 : vector<1x32xf32> to vector<8x32xf32>
    %8 = arith.addf %6, %7 : vector<8x32xf32>
    %c0_6 = arith.constant 0 : index
    %c0_7 = arith.constant 0 : index
    %9 = vector.load %arg6[%c0_6, %c0_7] : memref<32x32xbf16, #tpu.memory_space<vmem>>, vector<32x32xbf16>
    %c0_8 = arith.constant 0 : index
    %c0_9 = arith.constant 0 : index
    %10 = vector.load %arg7[%c0_8, %c0_9] : memref<1x32xf32, #tpu.memory_space<vmem>>, vector<1x32xf32>
    %11 = arith.truncf %2 : vector<8x32xf32> to vector<8x32xbf16>
    %cst_10 = arith.constant dense<0.000000e+00> : vector<8x32xf32>
    %12 = tpu.matmul %11, %9, %cst_10 {dimension_numbers = #tpu.dot_dimension_numbers<[1], [0], [0], [1], [0, 0, 1, 1], [], []>} : vector<8x32xbf16>, vector<32x32xbf16>, vector<8x32xf32> -> vector<8x32xf32>
    %13 = vector.broadcast %10 : vector<1x32xf32> to vector<8x32xf32>
    %14 = arith.addf %12, %13 : vector<8x32xf32>
    %15 = vector.shape_cast %8 : vector<8x32xf32> to vector<8x4x8xf32>
    %16 = arith.truncf %15 : vector<8x4x8xf32> to vector<8x4x8xbf16>
    %17 = vector.shape_cast %14 : vector<8x32xf32> to vector<8x4x8xf32>
    %18 = arith.truncf %17 : vector<8x4x8xf32> to vector<8x4x8xbf16>
    %19 = vector.extract_strided_slice %2 {offsets = [0, 0], sizes = [8, 32], strides = [1, 1]} : vector<8x32xf32> to vector<8x32xf32>
    %c0_11 = arith.constant 0 : index
    %c0_12 = arith.constant 0 : index
    %20 = vector.load %arg2[%c0_11, %c0_12] : memref<32x32xbf16, #tpu.memory_space<vmem>>, vector<32x32xbf16>
    %c0_13 = arith.constant 0 : index
    %c0_14 = arith.constant 0 : index
    %21 = vector.load %arg3[%c0_13, %c0_14] : memref<1x32xf32, #tpu.memory_space<vmem>>, vector<1x32xf32>
    %22 = arith.truncf %19 : vector<8x32xf32> to vector<8x32xbf16>
    %cst_15 = arith.constant dense<0.000000e+00> : vector<8x32xf32>
    %23 = tpu.matmul %22, %20, %cst_15 {dimension_numbers = #tpu.dot_dimension_numbers<[1], [0], [0], [1], [0, 0, 1, 1], [], []>} : vector<8x32xbf16>, vector<32x32xbf16>, vector<8x32xf32> -> vector<8x32xf32>
    %24 = vector.broadcast %21 : vector<1x32xf32> to vector<8x32xf32>
    %25 = arith.addf %23, %24 : vector<8x32xf32>
    %cst_16 = arith.constant 0.353553385 : f32
    %26 = vector.broadcast %cst_16 : f32 to vector<8x32xf32>
    %27 = arith.mulf %25, %26 : vector<8x32xf32>
    %28 = vector.shape_cast %27 : vector<8x32xf32> to vector<8x4x8xf32>
    %29 = arith.truncf %28 : vector<8x4x8xf32> to vector<8x4x8xbf16>
    "tpu.trace_start"() <{level = 10 : i32, message = "qhd,khd->hqk"}> : () -> ()
    %cst_17 = arith.constant dense<0.000000e+00> : vector<4x8x8xf32>
    %30 = tpu.matmul %29, %16, %cst_17 {dimension_numbers = #tpu.dot_dimension_numbers<[2], [2], [0], [0], [0, 1, 0, 0, 1, 0], [1], [1]>} : vector<8x4x8xbf16>, vector<8x4x8xbf16>, vector<4x8x8xf32> -> vector<4x8x8xf32>
    "tpu.trace_stop"() : () -> ()
    %cst_18 = arith.constant dense<0xFF800000> : vector<4x8xf32>
    %31 = vector.multi_reduction <maximumf>, %30, %cst_18 [2] : vector<4x8x8xf32> to vector<4x8xf32>
    %32 = vector.shape_cast %31 : vector<4x8xf32> to vector<4x8x1xf32>
    %33 = vector.broadcast %32 : vector<4x8x1xf32> to vector<4x8x8xf32>
    %34 = arith.subf %30, %33 : vector<4x8x8xf32>
    %35 = math.exp %34 : vector<4x8x8xf32>
    %cst_19 = arith.constant dense<0.000000e+00> : vector<4x8xf32>
    %36 = vector.multi_reduction <add>, %35, %cst_19 [2] : vector<4x8x8xf32> to vector<4x8xf32>
    %37 = vector.shape_cast %36 : vector<4x8xf32> to vector<4x8x1xf32>
    %38 = tpu.reciprocal %37 {approx = true} : vector<4x8x1xf32> -> vector<4x8x1xf32>
    %39 = vector.broadcast %38 : vector<4x8x1xf32> to vector<4x8x8xf32>
    %40 = arith.mulf %35, %39 : vector<4x8x8xf32>
    %41 = arith.truncf %40 : vector<4x8x8xf32> to vector<4x8x8xbf16>
    "tpu.trace_start"() <{level = 10 : i32, message = "hqk,khd->qhd"}> : () -> ()
    %cst_20 = arith.constant dense<0.000000e+00> : vector<4x8x8xf32>
    %42 = tpu.matmul %18, %41, %cst_20 {dimension_numbers = #tpu.dot_dimension_numbers<[0], [2], [2], [1], [0, 1, 0, 2, 1, 1], [1], [0]>} : vector<8x4x8xbf16>, vector<4x8x8xbf16>, vector<4x8x8xf32> -> vector<4x8x8xf32>
    %43 = tpu.transpose %42, [2, 0, 1] : vector<4x8x8xf32> -> vector<8x4x8xf32>
    "tpu.trace_stop"() : () -> ()
    %44 = vector.shape_cast %43 : vector<8x4x8xf32> to vector<8x32xf32>
    %c0_21 = arith.constant 0 : index
    %c0_22 = arith.constant 0 : index
    %45 = vector.load %arg8[%c0_21, %c0_22] : memref<32x32xbf16, #tpu.memory_space<vmem>>, vector<32x32xbf16>
    %c0_23 = arith.constant 0 : index
    %c0_24 = arith.constant 0 : index
    %46 = vector.load %arg9[%c0_23, %c0_24] : memref<1x32xf32, #tpu.memory_space<vmem>>, vector<1x32xf32>
    %47 = arith.truncf %44 : vector<8x32xf32> to vector<8x32xbf16>
    %cst_25 = arith.constant dense<0.000000e+00> : vector<8x32xf32>
    %48 = tpu.matmul %47, %45, %cst_25 {dimension_numbers = #tpu.dot_dimension_numbers<[1], [0], [0], [1], [0, 0, 1, 1], [], []>} : vector<8x32xbf16>, vector<32x32xbf16>, vector<8x32xf32> -> vector<8x32xf32>
    %49 = vector.broadcast %46 : vector<1x32xf32> to vector<8x32xf32>
    %50 = arith.addf %48, %49 : vector<8x32xf32>
    %51 = arith.addf %19, %50 : vector<8x32xf32>
    %cst_26 = arith.constant dense<0.000000e+00> : vector<8xf32>
    %52 = vector.multi_reduction <add>, %51, %cst_26 [1] : vector<8x32xf32> to vector<8xf32>
    %53 = vector.shape_cast %52 : vector<8xf32> to vector<8x1xf32>
    %cst_27 = arith.constant 3.200000e+01 : f32
    %54 = vector.broadcast %cst_27 : f32 to vector<8x1xf32>
    %55 = arith.divf %53, %54 : vector<8x1xf32>
    %56 = vector.broadcast %55 : vector<8x1xf32> to vector<8x32xf32>
    %57 = arith.subf %51, %56 : vector<8x32xf32>
    %58 = arith.mulf %57, %57 : vector<8x32xf32>
    %cst_28 = arith.constant dense<0.000000e+00> : vector<8xf32>
    %59 = vector.multi_reduction <add>, %58, %cst_28 [1] : vector<8x32xf32> to vector<8xf32>
    %60 = vector.shape_cast %59 : vector<8xf32> to vector<8x1xf32>
    %cst_29 = arith.constant 3.200000e+01 : f32
    %61 = vector.broadcast %cst_29 : f32 to vector<8x1xf32>
    %62 = arith.divf %60, %61 : vector<8x1xf32>
    %63 = vector.broadcast %55 : vector<8x1xf32> to vector<8x32xf32>
    %64 = arith.subf %51, %63 : vector<8x32xf32>
    %cst_30 = arith.constant 9.99999974E-6 : f32
    %65 = vector.broadcast %cst_30 : f32 to vector<8x1xf32>
    %66 = arith.addf %62, %65 : vector<8x1xf32>
    %67 = math.rsqrt %66 : vector<8x1xf32>
    %68 = vector.broadcast %67 : vector<8x1xf32> to vector<8x32xf32>
    %69 = arith.mulf %64, %68 : vector<8x32xf32>
    %c0_31 = arith.constant 0 : index
    %c0_32 = arith.constant 0 : index
    %70 = vector.load %arg14[%c0_31, %c0_32] : memref<1x32xf32, #tpu.memory_space<vmem>>, vector<1x32xf32>
    %71 = vector.broadcast %70 : vector<1x32xf32> to vector<8x32xf32>
    %72 = arith.mulf %69, %71 : vector<8x32xf32>
    %c0_33 = arith.constant 0 : index
    %c0_34 = arith.constant 0 : index
    %73 = vector.load %arg15[%c0_33, %c0_34] : memref<1x32xf32, #tpu.memory_space<vmem>>, vector<1x32xf32>
    %74 = vector.broadcast %73 : vector<1x32xf32> to vector<8x32xf32>
    %75 = arith.addf %72, %74 : vector<8x32xf32>
    %76 = arith.truncf %75 : vector<8x32xf32> to vector<8x32xbf16>
    %cst_35 = arith.constant 0.000000e+00 : f32
    %77 = vector.broadcast %cst_35 : f32 to vector<8x32xf32>
    %c0_36 = arith.constant 0 : index
    %c0_37 = arith.constant 0 : index
    %78 = vector.load %arg10[%c0_36, %c0_37] : memref<32x64xbf16, #tpu.memory_space<vmem>>, vector<32x64xbf16>
    %cst_38 = arith.constant dense<0.000000e+00> : vector<8x64xf32>
    %79 = tpu.matmul %76, %78, %cst_38 {dimension_numbers = #tpu.dot_dimension_numbers<[1], [0], [0], [1], [0, 0, 1, 1], [], []>} : vector<8x32xbf16>, vector<32x64xbf16>, vector<8x64xf32> -> vector<8x64xf32>
    %c0_39 = arith.constant 0 : index
    %c0_40 = arith.constant 0 : index
    %80 = vector.load %arg11[%c0_39, %c0_40] : memref<1x64xf32, #tpu.memory_space<vmem>>, vector<1x64xf32>
    %81 = vector.broadcast %80 : vector<1x64xf32> to vector<8x64xf32>
    %82 = arith.addf %79, %81 : vector<8x64xf32>
    %cst_41 = arith.constant 0.000000e+00 : f32
    %83 = vector.broadcast %cst_41 : f32 to vector<8x64xf32>
    %84 = arith.maximumf %82, %83 : vector<8x64xf32>
    %85 = arith.truncf %84 : vector<8x64xf32> to vector<8x64xbf16>
    %c0_42 = arith.constant 0 : index
    %c0_43 = arith.constant 0 : index
    %86 = vector.load %arg12[%c0_42, %c0_43] : memref<64x32xbf16, #tpu.memory_space<vmem>>, vector<64x32xbf16>
    %cst_44 = arith.constant dense<0.000000e+00> : vector<8x32xf32>
    %87 = tpu.matmul %85, %86, %cst_44 {dimension_numbers = #tpu.dot_dimension_numbers<[1], [0], [0], [1], [0, 0, 1, 1], [], []>} : vector<8x64xbf16>, vector<64x32xbf16>, vector<8x32xf32> -> vector<8x32xf32>
    %88 = arith.addf %77, %87 : vector<8x32xf32>
    %c0_45 = arith.constant 0 : index
    %c0_46 = arith.constant 0 : index
    %89 = vector.load %arg13[%c0_45, %c0_46] : memref<1x32xf32, #tpu.memory_space<vmem>>, vector<1x32xf32>
    %90 = vector.broadcast %89 : vector<1x32xf32> to vector<8x32xf32>
    %91 = arith.addf %88, %90 : vector<8x32xf32>
    %92 = arith.addf %75, %91 : vector<8x32xf32>
    %cst_47 = arith.constant dense<0.000000e+00> : vector<8xf32>
    %93 = vector.multi_reduction <add>, %92, %cst_47 [1] : vector<8x32xf32> to vector<8xf32>
    %94 = vector.shape_cast %93 : vector<8xf32> to vector<8x1xf32>
    %cst_48 = arith.constant 3.200000e+01 : f32
    %95 = vector.broadcast %cst_48 : f32 to vector<8x1xf32>
    %96 = arith.divf %94, %95 : vector<8x1xf32>
    %97 = vector.broadcast %96 : vector<8x1xf32> to vector<8x32xf32>
    %98 = arith.subf %92, %97 : vector<8x32xf32>
    %99 = arith.mulf %98, %98 : vector<8x32xf32>
    %cst_49 = arith.constant dense<0.000000e+00> : vector<8xf32>
    %100 = vector.multi_reduction <add>, %99, %cst_49 [1] : vector<8x32xf32> to vector<8xf32>
    %101 = vector.shape_cast %100 : vector<8xf32> to vector<8x1xf32>
    %cst_50 = arith.constant 3.200000e+01 : f32
    %102 = vector.broadcast %cst_50 : f32 to vector<8x1xf32>
    %103 = arith.divf %101, %102 : vector<8x1xf32>
    %104 = vector.broadcast %96 : vector<8x1xf32> to vector<8x32xf32>
    %105 = arith.subf %92, %104 : vector<8x32xf32>
    %cst_51 = arith.constant 9.99999974E-6 : f32
    %106 = vector.broadcast %cst_51 : f32 to vector<8x1xf32>
    %107 = arith.addf %103, %106 : vector<8x1xf32>
    %108 = math.rsqrt %107 : vector<8x1xf32>
    %109 = vector.broadcast %108 : vector<8x1xf32> to vector<8x32xf32>
    %110 = arith.mulf %105, %109 : vector<8x32xf32>
    %c0_52 = arith.constant 0 : index
    %c0_53 = arith.constant 0 : index
    %111 = vector.load %arg16[%c0_52, %c0_53] : memref<1x32xf32, #tpu.memory_space<vmem>>, vector<1x32xf32>
    %112 = vector.broadcast %111 : vector<1x32xf32> to vector<8x32xf32>
    %113 = arith.mulf %110, %112 : vector<8x32xf32>
    %c0_54 = arith.constant 0 : index
    %c0_55 = arith.constant 0 : index
    %114 = vector.load %arg17[%c0_54, %c0_55] : memref<1x32xf32, #tpu.memory_space<vmem>>, vector<1x32xf32>
    %115 = vector.broadcast %114 : vector<1x32xf32> to vector<8x32xf32>
    %116 = arith.addf %113, %115 : vector<8x32xf32>
    %117 = arith.truncf %116 : vector<8x32xf32> to vector<8x32xbf16>
    %c0_56 = arith.constant 0 : index
    %c0_57 = arith.constant 0 : index
    %c0_58 = arith.constant 0 : index
    %118 = vector.load %arg18[%c0_56, %c0_57, %c0_58] : memref<1x8x32xbf16, #tpu.memory_space<vmem>>, vector<1x8x32xbf16>
    %119 = vector.shape_cast %118 : vector<1x8x32xbf16> to vector<8x32xbf16>
    %120 = vector.shape_cast %117 : vector<8x32xbf16> to vector<1x8x32xbf16>
    tpu.vector_store %arg18[%c0_56, %c0_57, %c0_58], %120 {strides = array<i32>} : memref<1x8x32xbf16, #tpu.memory_space<vmem>>, vector<1x8x32xbf16>,
    return
  }
  func.func @transform_0(%arg0: i32) -> (i32, i32, i32) {
    %c0_i32 = arith.constant 0 : i32
    %c0_i32_0 = arith.constant 0 : i32
    %c0_i32_1 = arith.constant 0 : i32
    return %arg0, %c0_i32, %c0_i32_0 : i32, i32, i32
  }
  func.func @transform_1(%arg0: i32) -> (i32, i32) {
    %c0_i32 = arith.constant 0 : i32
    %c0_i32_0 = arith.constant 0 : i32
    %c0_i32_1 = arith.constant 0 : i32
    return %c0_i32, %c0_i32_0 : i32, i32
  }
  func.func @transform_2(%arg0: i32) -> (i32, i32) {
    %c0_i32 = arith.constant 0 : i32
    %c0_i32_0 = arith.constant 0 : i32
    %c0_i32_1 = arith.constant 0 : i32
    return %c0_i32, %c0_i32_0 : i32, i32
  }
  func.func @transform_3(%arg0: i32) -> (i32, i32) {
    %c0_i32 = arith.constant 0 : i32
    %c0_i32_0 = arith.constant 0 : i32
    %c0_i32_1 = arith.constant 0 : i32
    return %c0_i32, %c0_i32_0 : i32, i32
  }
  func.func @transform_4(%arg0: i32) -> (i32, i32) {
    %c0_i32 = arith.constant 0 : i32
    %c0_i32_0 = arith.constant 0 : i32
    %c0_i32_1 = arith.constant 0 : i32
    return %c0_i32, %c0_i32_0 : i32, i32
  }
  func.func @transform_5(%arg0: i32) -> (i32, i32) {
    %c0_i32 = arith.constant 0 : i32
    %c0_i32_0 = arith.constant 0 : i32
    %c0_i32_1 = arith.constant 0 : i32
    return %c0_i32, %c0_i32_0 : i32, i32
  }
  func.func @transform_6(%arg0: i32) -> (i32, i32) {
    %c0_i32 = arith.constant 0 : i32
    %c0_i32_0 = arith.constant 0 : i32
    %c0_i32_1 = arith.constant 0 : i32
    return %c0_i32, %c0_i32_0 : i32, i32
  }
  func.func @transform_7(%arg0: i32) -> (i32, i32) {
    %c0_i32 = arith.constant 0 : i32
    %c0_i32_0 = arith.constant 0 : i32
    %c0_i32_1 = arith.constant 0 : i32
    return %c0_i32, %c0_i32_0 : i32, i32
  }
  func.func @transform_8(%arg0: i32) -> (i32, i32) {
    %c0_i32 = arith.constant 0 : i32
    %c0_i32_0 = arith.constant 0 : i32
    %c0_i32_1 = arith.constant 0 : i32
    return %c0_i32, %c0_i32_0 : i32, i32
  }
  func.func @transform_9(%arg0: i32) -> (i32, i32) {
    %c0_i32 = arith.constant 0 : i32
    %c0_i32_0 = arith.constant 0 : i32
    %c0_i32_1 = arith.constant 0 : i32
    return %c0_i32, %c0_i32_0 : i32, i32
  }
  func.func @transform_10(%arg0: i32) -> (i32, i32) {
    %c0_i32 = arith.constant 0 : i32
    %c0_i32_0 = arith.constant 0 : i32
    %c0_i32_1 = arith.constant 0 : i32
    return %c0_i32, %c0_i32_0 : i32, i32
  }
  func.func @transform_11(%arg0: i32) -> (i32, i32) {
    %c0_i32 = arith.constant 0 : i32
    %c0_i32_0 = arith.constant 0 : i32
    %c0_i32_1 = arith.constant 0 : i32
    return %c0_i32, %c0_i32_0 : i32, i32
  }
  func.func @transform_12(%arg0: i32) -> (i32, i32) {
    %c0_i32 = arith.constant 0 : i32
    %c0_i32_0 = arith.constant 0 : i32
    %c0_i32_1 = arith.constant 0 : i32
    return %c0_i32, %c0_i32_0 : i32, i32
  }
  func.func @transform_13(%arg0: i32) -> (i32, i32) {
    %c0_i32 = arith.constant 0 : i32
    %c0_i32_0 = arith.constant 0 : i32
    %c0_i32_1 = arith.constant 0 : i32
    return %c0_i32, %c0_i32_0 : i32, i32
  }
  func.func @transform_14(%arg0: i32) -> (i32, i32) {
    %c0_i32 = arith.constant 0 : i32
    %c0_i32_0 = arith.constant 0 : i32
    %c0_i32_1 = arith.constant 0 : i32
    return %c0_i32, %c0_i32_0 : i32, i32
  }
  func.func @transform_15(%arg0: i32) -> (i32, i32) {
    %c0_i32 = arith.constant 0 : i32
    %c0_i32_0 = arith.constant 0 : i32
    %c0_i32_1 = arith.constant 0 : i32
    return %c0_i32, %c0_i32_0 : i32, i32
  }
  func.func @transform_16(%arg0: i32) -> (i32, i32) {
    %c0_i32 = arith.constant 0 : i32
    %c0_i32_0 = arith.constant 0 : i32
    %c0_i32_1 = arith.constant 0 : i32
    return %c0_i32, %c0_i32_0 : i32, i32
  }
  func.func @transform_17(%arg0: i32) -> (i32, i32, i32) {
    %c0_i32 = arith.constant 0 : i32
    %c0_i32_0 = arith.constant 0 : i32
    %c0_i32_1 = arith.constant 0 : i32
    return %arg0, %c0_i32, %c0_i32_0 : i32, i32, i32
  }
}

</mosaic_0001>

<bundles_post_ra>
// kernel: tpu_custom_call.1
= control target key start
LH: loop header
LB: loop body
LE: loop exit
PB: predicated region body
PF: predicated region fallthrough
CT: control target
= control target key end

     0   :  { %s4302_s0 = inlined_call_operand.hbm [shape: bf16[2,8,32], index: 0, kind: input, shape index: {}]   ;;  %s4303_s1 = inlined_call_operand.vmem [shape: bf16[32,32], index: 1, kind: input, shape index: {}]   ;;  %s4304_s2 = inlined_call_operand.hbm [shape: f32[1,32], index: 2, kind: input, shape index: {}]   ;;  %s4305_s3 = inlined_call_operand.vmem [shape: bf16[32,32], index: 3, kind: input, shape index: {}]   ;;  %s4306_s4 = inlined_call_operand.hbm [shape: f32[1,32], index: 4, kind: input, shape index: {}]   ;;  %s4307_s5 = inlined_call_operand.vmem [shape: bf16[32,32], index: 5, kind: input, shape index: {}]   ;;  %s4308_s6 = inlined_call_operand.hbm [shape: f32[1,32], index: 6, kind: input, shape index: {}]   ;;  %s4309_s7 = inlined_call_operand.hbm [shape: bf16[32,32], index: 7, kind: input, shape index: {}]   ;;  %s4310_s8 = inlined_call_operand.hbm [shape: f32[1,32], index: 8, kind: input, shape index: {}]   ;;  %s4311_s9 = inlined_call_operand.vmem [shape: bf16[32,64], index: 9, kind: input, shape index: {}]   ;;  %s4312_s10 = inlined_call_operand.vmem [shape: f32[1,64], index: 10, kind: input, shape index: {}]   ;;  %s4313_s11 = inlined_call_operand.vmem [shape: bf16[64,32], index: 11, kind: input, shape index: {}]   ;;  %s4314_s12 = inlined_call_operand.vmem [shape: f32[1,32], index: 12, kind: input, shape index: {}]   ;;  %s4315_s13 = inlined_call_operand.vmem [shape: f32[1,32], index: 13, kind: input, shape index: {}]   ;;  %s4316_s14 = inlined_call_operand.vmem [shape: f32[1,32], index: 14, kind: input, shape index: {}]   ;;  %s4317_s15 = inlined_call_operand.vmem [shape: f32[1,32], index: 15, kind: input, shape index: {}]   ;;  %s4318_s16 = inlined_call_operand.vmem [shape: f32[1,32], index: 16, kind: input, shape index: {}]   ;;  %s4319_s17 = inlined_call_operand.hbm [shape: bf16[2,8,32], index: 17, kind: output, shape index: {}]  }
   0x1   :  { %4331 = sst [smem:[#allocation23_spill]] %s4302_s0 }
   0x2   :  { %4332 = sst [smem:[#allocation24_spill]] %s4303_s1 }
   0x3   :  { %4333 = sst [smem:[#allocation25_spill]] %s4304_s2 }
   0x4   :  { %4334 = sst [smem:[#allocation26_spill]] %s4306_s4 }
   0x5   :  { %4335 = sst [smem:[#allocation27_spill]] %s4308_s6 }
   0x6   :  { %4336 = sst [smem:[#allocation28_spill]] %s4309_s7 }
   0x7   :  { %4337 = sst [smem:[#allocation29_spill]] %s4310_s8 }
   0x8   :  { %4338 = sst [smem:[#allocation30_spill]] %s4318_s16 }
   0x9   :  { %4339 = sst [smem:[#allocation31_spill]] %s4319_s17 }
   0xa   :  { %22 = vsyncpa [#allocation3], 0 }
   0xb   :  { %24 = vsyncpa [#allocation3 + $0x1], 0 }
   0xc   :  { %25 = vsyncpa [#allocation6], 0 }
   0xd   :  { %26 = vsyncpa [#allocation9], 0 }
   0xe   :  { %27 = vsyncpa [#allocation12], 0 }
   0xf   :  { %28 = vsyncpa [#allocation4], 0 }
  0x10   :  { %30 = vsyncpa [#allocation4 + $0x1], 0  ;;  %s3789_s24 = smov 0   ;;  %s3791_s25 = smov 0  }
  0x11   :  { %s3793_s26 = smov 0   ;;  %s3795_s27 = smov 0  }
  0x12 LB: > { %4340 = sst [smem:[#allocation19_spill]] %s3673_s26  ;;  %s3679_s28 = smov [#allocation5]   ;;  %s3677_s27 = sphi %s3795_s27, %s4372_s27   ;;  %s3673_s26 = sphi %s3793_s26, %s4374_s26   ;;  %s3669_s25 = sphi %s3791_s25, %s4376_s25   ;;  %s3665_s24 = sphi %s3789_s24, %s4375_s24  }
  0x13   : > { %4341 = sst [smem:[#allocation20_spill]] %s3677_s27  ;;  %s445_s29 = sshll.u32 %s3679_s28, 4  ;;  %s446_s29 = int_to_ptr.vmem [resolvable:$true] %s445_s29 }
  0x14   : > { %s3810_s0 = sadd.s32 4294967295, %s3677_s27   ;;  %p3097_p0 = scmp.ge.s32.totalorder %s3677_s27, 1 }
  0x15   : > { %p4324_p1 = scmp.eq.s32.totalorder %s3810_s0, 0  ;;  %p429_p2 = scmp.lt.s32.totalorder %s3677_s27, 3 }
  0x16   : > { %s3680_s18 = smov [#allocation8]   ;;  %s3681_s1 = smov [#allocation7]  }
  0x17   : > { %p3815_p3 = pnand %p3097_p0, %p429_p2  ;;  %s473_s19 = sshll.u32 %s3680_s18, 4  ;;  %s3822_s19 = int_to_ptr.vmem [resolvable:$true] %s473_s19 }
  0x18   : > { %s459_s20 = sshll.u32 %s3681_s1, 4  ;;  %s3682_s22 = smov [#allocation10]   ;;  %s3830_s20 = int_to_ptr.vmem [resolvable:$true] %s459_s20 }
  0x19   : > { %s4342_s30 = scalar_select %p3815_p3, 1, 0 }
  0x1a   : > { %p3322_p5 = pneg %p3815_p3  ;;  %s3832_s23 = sshll.u32 %s3682_s22, 4  ;;  %s484_s23 = int_to_ptr.vmem [resolvable:$true] %s3832_s23 }
  0x1b   : > { %s3454_s18 = scalar_lea.vmem %s446_s29, 16  ;;  %s3461_s1 = scalar_lea.vmem %s446_s29, 32 }
  0x1c   : > { %p3826_p6 = pnand %p3322_p5, %p4324_p1  ;;  %p3455_p8 = scmp.ne.s32.totalorder %s446_s29, %s3454_s18 }
  0x1d   : > { %p3462_p11 = scmp.lt.s32.totalorder %s446_s29, %s446_s29  ;;  %p3463_p12 = scmp.lt.s32.totalorder %s3461_s1, %s3454_s18 }
  0x1e   : > { %p3836_p7 = pneg %p3826_p6 }
  0x1f   : > { %p3464_p13 = por %p3463_p12, %p3462_p11 }
  0x20   : > { %p3457_p9 = pnand %p3455_p8, %p3836_p7 }
  0x22   : > { %p3458_p10 = pneg %p3457_p9 }
  0x24   : > { %p3465_p0 = pnand %p3464_p13, %p3458_p10 }
  0x26   : > { %3468 = shalt.err (!%p3465_p0)
}
  0x27   : > { %s4345_s2 = sld [smem:[#allocation25_spill]]  ;;  %s3480_s16 = scalar_lea.vmem %s3822_s19, 16 }
  0x28   : > { %p3481_p2 = scmp.ne.s32.totalorder %s3822_s19, %s3480_s16  ;;  %s3487_s18 = scalar_lea.vmem %s3822_s19, 32 }
  0x29   : > { %p3488_p9 = scmp.lt.s32.totalorder %s3822_s19, %s3822_s19  ;;  %p3489_p10 = scmp.lt.s32.totalorder %s3487_s18, %s3480_s16 }
  0x2a   : > { %p3483_p5 = pnand %p3481_p2, %p3836_p7 }
  0x2b   : > { %p3490_p11 = por %p3489_p10, %p3488_p9 }
  0x2c   : > { %p3484_p8 = pneg %p3483_p5 }
  0x2d   : > { %3325 = dma.hbm_to_vmem [thread:$0]  (!%p3826_p6), %s4345_s2, 16, %s446_s29, [#allocation6]  }
  0x2e   : > { %p3491_p12 = pnand %p3490_p11, %p3484_p8 }
  0x30   : > { %3494 = shalt.err (!%p3491_p12)
}
  0x31   : > { %s4346_s6 = sld [smem:[#allocation27_spill]]  ;;  %s3506_s29 = scalar_lea.vmem %s3830_s20, 16 }
  0x32   : > { %p3507_p13 = scmp.ne.s32.totalorder %s3830_s20, %s3506_s29  ;;  %s3513_s16 = scalar_lea.vmem %s3830_s20, 32 }
  0x33   : > { %p3514_p5 = scmp.lt.s32.totalorder %s3830_s20, %s3830_s20  ;;  %p3515_p8 = scmp.lt.s32.totalorder %s3513_s16, %s3506_s29 }
  0x34   : > { %p3509_p0 = pnand %p3507_p13, %p3836_p7 }
  0x35   : > { %p3516_p9 = por %p3515_p8, %p3514_p5 }
  0x36   : > { %p3510_p2 = pneg %p3509_p0 }
  0x37   : > { %3331 = dma.hbm_to_vmem [thread:$0]  (!%p3826_p6), %s4346_s6, 16, %s3822_s19, [#allocation9]  }
  0x38   : > { %p3517_p10 = pnand %p3516_p9, %p3510_p2 }
  0x3a   : > { %3520 = shalt.err (!%p3517_p10)
}
  0x3b   : > { %s4347_s4 = sld [smem:[#allocation26_spill]]  ;;  %s3532_s19 = scalar_lea.vmem %s484_s23, 256 }
  0x3c   : > { %p3533_p11 = scmp.ne.s32.totalorder %s484_s23, %s3532_s19  ;;  %p3540_p0 = scmp.lt.s32.totalorder %s484_s23, %s484_s23 }
  0x3d   : > { %p3541_p4 = scmp.lt.s32.totalorder %s3532_s19, %s3532_s19 }
  0x3e   : > { %p3535_p12 = pnand %p3533_p11, %p3836_p7 }
  0x3f   : > { %p3542_p5 = por %p3541_p4, %p3540_p0 }
  0x40   : > { %p3536_p13 = pneg %p3535_p12 }
  0x41   : > { %3328 = dma.hbm_to_vmem [thread:$0]  (!%p3826_p6), %s4347_s4, 16, %s3830_s20, [#allocation6]  }
  0x42   : > { %p3543_p2 = pnand %p3542_p5, %p3536_p13 }
  0x44   : > { %3546 = shalt.err (!%p3543_p2)
}
  0x45   : > { %s3683_s17 = smov 64   ;;  %s3684_s1 = smov 4  }
  0x46   : > { %s4348_s7 = sld [smem:[#allocation28_spill]]  ;;  %s3685_s20 = smov [#allocation11]  }
  0x47   : > { %s497_s22 = sshll.u32 %s3685_s20, 4  ;;  %s498_s22 = int_to_ptr.vmem [resolvable:$true] %s497_s22 }
  0x48   : > { %s3558_s18 = scalar_lea.vmem %s498_s22, 16  ;;  %s3565_s19 = scalar_lea.vmem %s498_s22, 32 }
  0x49   : > { %p3559_p8 = scmp.ne.s32.totalorder %s498_s22, %s3558_s18  ;;  %p3566_p4 = scmp.lt.s32.totalorder %s498_s22, %s498_s22 }
  0x4a   : > { %p3567_p11 = scmp.lt.s32.totalorder %s3565_s19, %s3558_s18 }
  0x4b   : > { %p3561_p9 = pnand %p3559_p8, %p3836_p7 }
  0x4c   : > { %3334 = dma.hbm_to_vmem [thread:$0]  (!%p3826_p6), %s4348_s7, 256, %s484_s23, [#allocation9], %s3683_s17, %s3683_s17, %s3684_s1  }
  0x4d   : > { %p3562_p10 = pneg %p3561_p9  ;;  %p3568_p12 = por %p3567_p11, %p3566_p4 }
  0x4f   : > { %p3569_p13 = pnand %p3568_p12, %p3562_p10 }
  0x51   : > { %3572 = shalt.err (!%p3569_p13)
}
  0x52   : > { %s4349_s8 = sld [smem:[#allocation29_spill]]  ;;  %s3096_s23 = sadd.s32 4294967294, %s3677_s27  }
  0x53   : > { %s3890_s21 = sadd.s32 1, %s3677_s27   ;;  %s43_s2 = sadd.s32 1, %s3673_s26 }
  0x54   : > { %4350 = sst [smem:[#allocation21_spill]] %s3890_s21  ;;  %s40_s4 = ssub.s32 %s3677_s27, %s3890_s21 }
  0x55   : > { %p50_p7 = scmp.ne.s32.totalorder %s3673_s26, %s3669_s25  ;;  %p41_p0 = scmp.eq.s32.totalorder %s40_s4, 0 }
  0x56   : > { %p51_p5 = scmp.eq.s32.totalorder %s3677_s27, 0  ;;  %p56_p2 = scmp.ne.s32.totalorder %s3669_s25, %s3665_s24 }
  0x57   : > { %p416_p8 = scmp.eq.s32.totalorder %s3810_s0, 1  ;;  %p422_p4 = scmp.eq.s32.totalorder %s3096_s23, 1 }
  0x58   : > { %3337 = dma.hbm_to_vmem [thread:$0]  (!%p3826_p6), %s4349_s8, 16, %s498_s22, [#allocation12]  }
  0x59   : > { %s3902_s28 = scalar_select %p41_p0, %s3673_s26, %s43_s2  }
  0x5a   : > { %p52_p9 = por %p51_p5, %p50_p7  ;;  %p3906_p10 = por %p4324_p1, %p56_p2 }
  0x5b   : > { %4351 = sst [smem:[#allocation22_spill]] %s3902_s28  ;;  %p3910_p6 = por %p416_p8, %p50_p7 }
  0x5c   : > { %s4352_s17 = scalar_select %p3906_p10, 1, 0 }
  0x5d   : > { %s4353_s1 = scalar_select %p3910_p6, 1, 0 }
  0x5e   : > { %p3351_p11 = scmp.lt.s32.totalorder %s3677_s27, 2  ;;  %s532_s29 = sand.u32 1, %s3673_s26  }
  0x5f   : > { %p3916_p12 = por %p422_p4, %p56_p2  ;;  %s3104_s20 = sshll.u32 %s532_s29, 2 }
  0x60   : > { %s3105_s22 = sshll.u32 %s3677_s27, 6  ;;  %s4355_s2 = sld [smem:[#allocation23_spill]] }
  0x61   : > { %s4354_s16 = scalar_select %p3916_p12, 1, 0 }
  0x62   : > { %s536_s6 = scalar_lea.vmem [#allocation2], %s3104_s20  ;;  %p3926_p13 = pnand %p3351_p11, %p52_p9 }
  0x63   : > { %s543_s7 = sshll.u32 %s536_s6, 4  ;;  %s533_s8 = scalar_lea.sflag [#allocation3], %s532_s29  ;;  %s544_s7 = int_to_ptr.vmem [resolvable:$true] %s543_s7 }
  0x64   : > { %p3575_p0 = pneg %p3926_p13 }
  0x66   : > { %s3924_s4 = scalar_lea.hbm %s4355_s2, %s3105_s22  ;;  %s3578_s19 = scalar_lea.hbm %s4355_s2, 128 }
  0x67   : > { %s3573_s28 = scalar_lea.hbm %s3924_s4, 64  ;;  %p3579_p8 = scmp.lt.s32.totalorder %s3924_s4, %s4355_s2 }
  0x68   : > { %p3574_p7 = scmp.ne.s32.totalorder %s3924_s4, %s3573_s28  ;;  %p3580_p9 = scmp.lt.s32.totalorder %s3578_s19, %s3573_s28 }
  0x6a   : > { %p3576_p5 = pnand %p3575_p0, %p3574_p7  ;;  %p3581_p4 = por %p3580_p9, %p3579_p8 }
  0x6c   : > { %p3577_p2 = pneg %p3576_p5 }
  0x6e   : > { %p3582_p11 = pnand %p3581_p4, %p3577_p2 }
  0x70   : > { %3585 = shalt.err (!%p3582_p11)
}
  0x71   : > { %s3586_s6 = scalar_lea.vmem %s544_s7, 64  ;;  %s3686_s29 = smov [#allocation2]  }
  0x72   : > { %p3587_p1 = scmp.ne.s32.totalorder %s544_s7, %s3586_s6  ;;  %s3591_s21 = sshll.u32 %s3686_s29, 4  ;;  %s3592_s21 = int_to_ptr.vmem [resolvable:$false] %s3591_s21 }
  0x73   : > { %s3593_s27 = scalar_lea.vmem %s3592_s21, 128  ;;  %p3594_p7 = scmp.lt.s32.totalorder %s544_s7, %s3592_s21 }
  0x74   : > { %p3589_p12 = pnand %p3587_p1, %p3575_p0  ;;  %p3595_p5 = scmp.lt.s32.totalorder %s3593_s27, %s3586_s6 }
  0x76   : > { %p3590_p6 = pneg %p3589_p12  ;;  %p3596_p10 = por %p3595_p5, %p3594_p7 }
  0x78   : > { %p3597_p3 = pnand %p3596_p10, %p3590_p6 }
  0x7a   : > { %3600 = shalt.err (!%p3597_p3)
}
  0x7b   : > { %3341 = dma.hbm_to_vmem [thread:$0]  (!%p3926_p13), %s3924_s4, 64, %s544_s7, %s533_s8  }
  0x7c   : > { %p4357_p2 = scmp.ne.s32.totalorder %s4342_s30, 0 }
  0x7d   : > { %s3947_s26 = sand.u32 (!%p4357_p2), 1, %s3669_s25   ;;  %p4358_p1 = scmp.ne.s32.totalorder (!%p4357_p2), %s4352_s17, 0 }
  0x7e   : > { %552 = sbr.rel (%p4357_p2) target bundleno = 3077 (0xc05), region = 88  ;;  %s3107_s28 = sshll.u32 (!%p4357_p2), %s3947_s26, 2 }
  0x7f   : > { %s555_s21 = scalar_lea.sflag (!%p4357_p2), [#allocation3], %s3947_s26  ;;  %s3953_s27 = scalar_lea.vmem (!%p4357_p2), [#allocation2], %s3107_s28 }
  0x83   : > { %3644 = dma.done.wait (%p4358_p1), %s555_s21, 64  }
  0x84   : > { %3646 = vsyncadd (%p4358_p1), %s555_s21, 4294967232  ;;  %p4359_p3 = scmp.eq.s32.totalorder %s3810_s0, 0 }
  0x86   : > { %3648 = dma.done.wait (%p4359_p3), [#allocation6], 32   ;;  %p4360_p10 = pmov %p4359_p3 }
  0x87   : > { %p4361_p6 = pmov %p4359_p3 }
  0x88   : > { %3650 = vsyncadd (%p4360_p10), [#allocation6], 4294967264 }
  0x89   : > { %3652 = dma.done.wait (%p4361_p6), [#allocation9], 272   ;;  %p4362_p12 = pmov %p4359_p3 }
  0x8a   : > { %p4363_p13 = pmov %p4359_p3 }
  0x8b   : > { %3654 = vsyncadd (%p4362_p12), [#allocation9], 4294967024 }
  0x8c   : > { %3656 = dma.done.wait (%p4363_p13), [#allocation12], 16   ;;  %p4364_p0 = pmov %p4359_p3 }
  0x8d   : > { %v3687_v0 = vmov 0.0   ;;  %vm3688_vm0 = vmmov 0   ;;  %v3408_v1 = vld [vmem:[%s4305_s3 + $0x8] sm:$0xff]   ;;  %v3409_v2 = vld [vmem:[%s4305_s3] sm:$0xff]   ;;  %vm655_vm1 = vcmask 261120   ;;  %s4365_s22 = sld [smem:[#allocation24_spill]]  ;;  %v777_v18 = vlaneseq }
  0x8e   : > { %3658 = vsyncadd (%p4364_p0), [#allocation12], 4294967280  ;;  %3198 = vmatprep.subr.bf16.mxu0 %v3687_v0  ;;  %3202 = vmatprep.mubr.msk.bf16.mxu0 %vm3688_vm0, %v3687_v0  ;;  %v3985_v3 = vld [vmem:[%s3953_s27] sm:$0xf]  ;;  %v3114_v6 = vld [vmem:[#allocation7] ss:$0 sm:$0xff] }
  0x8f   : > { %3206 = vmatprep.subr.bf16.mxu1 %v3687_v0  ;;  %3210 = vmatprep.mubr.msk.bf16.mxu1 %vm3688_vm0, %v3687_v0  ;;  %s3689_s20 = smov 104   ;;  %s3690_s6 = smov 120   ;;  %v3692_v16 = vmov 1983009808   ;;  %v3693_v19 = vmov 1934713408  }
  0x90   : > { %3199 = vmatpush3.bf16.msra.mxu0 %v3408_v1  ;;  %s3691_s29 = smov 112   ;;  %v775_v17 = vunpack.c.l.s4 %v3692_v16  ;;  %v807_v20 = vunpack.c.l.s4 %v3693_v19  ;;  %v778_v22 = vshrl.u32 %v777_v18, 7  ;;  %v3122_v51 = vld [vmem:[#allocation5] ss:$0 sm:$0xff]  ;;  %v3413_v61 = vld [vmem:[%s4307_s5] sm:$0xff]   ;;  %vm1568_vm2 = vcmask 1043456  }
  0x91   : > { %3200 = vmatprep.subr.bf16.mxu0 %v3687_v0  ;;  %v3412_v60 = vld [vmem:[%s4307_s5 + $0x8] sm:$0xff]   ;;  %vm1564_vm3 = vcmask 64512   ;;  %s3695_s17 = smov 16   ;;  %s3696_s4 = smov 8   ;;  %vm2677_vm4 = vcmask 130048   ;;  %vm2679_vm5 = vcmask 195584  }
  0x92   : > { %v776_v21 = vunpack.c.0.s8 %v775_v17  ;;  %v808_v25 = vunpack.c.0.s8 %v807_v20  ;;  %3207 = vmatpush3.bf16.msra.mxu1 %v3412_v60  ;;  %s3697_s23 = smov 24   ;;  %vm2887_vm6 = vcmask 523264   ;;  %s628_s18 = scalar_lea.vmem [#allocation13], %s3107_s28  ;;  %vm2962_vm7 = vcmask 257024  }
  0x93   : > { %v3410_v4 = vld [vmem:[%s4365_s22 + $0x8] sm:$0xff]   ;;  %v3411_v5 = vld [vmem:[%s4365_s22] sm:$0xff]   ;;  %3208 = vmatprep.subr.bf16.mxu1 %v3687_v0  ;;  %s2978_s19 = sshll.u32 %s628_s18, 4  ;;  %s2965_s21 = scalar_lea.sflag [#allocation4], %s3947_s26  ;;  %s2979_s19 = int_to_ptr.vmem [resolvable:$true] %s2978_s19 }
  0x94   : > { %3201 = vmatpush3.bf16.msra.mxu0 %v3409_v2  ;;  %v4007_v26 = vsub.s32 %v776_v21, %v778_v22  ;;  %v4009_v32 = vsub.s32 %v808_v25, %v778_v22  ;;  %s3601_s7 = scalar_lea.vmem %s2979_s19, 64  ;;  %p4368_p9 = scmp.ne.s32.totalorder %s4353_s1, 0 }
  0x95   : > { %3214 = vmatprep.subr.bf16.mxu0 %v3687_v0  ;;  %p3602_p8 = scmp.ne.s32.totalorder %s2979_s19, %s3601_s7  ;;  %s3698_s8 = smov [#allocation13]  }
  0x96   : > { %3209 = vmatpush3.bf16.msra.mxu1 %v3413_v61 }
  0x97   : > { %3203 = vmatmul.mubr.msk.bf16.vlgmr.msra.gmra.mxu0 %vm655_vm1, %v3985_v3  ;;  %3222 = vmatprep.subr.bf16.mxu1 %v3687_v0  ;;  %p3603_p4 = pnand %p3602_p8, %p4368_p9 }
  0x98   : > { %3215 = vmatpush3.bf16.msra.mxu0 %v3410_v4  ;;  %3218 = vmatprep.mubr.msk.bf16.mxu0 %vm3688_vm0, %v3687_v0 }
  0x99   : > { %3216 = vmatprep.subr.bf16.mxu0 %v3687_v0  ;;  %3211 = vmatmul.mubr.msk.bf16.vlgmr.msra.gmra.mxu1 %vm655_vm1, %v3985_v3  ;;  %p3604_p11 = pneg %p3603_p4 }
  0x9a   : > { %3224 = vmatprep.mubr.msk.bf16.mxu1 %vm3688_vm0, %v3687_v0 }
  0x9c   : > { %3217 = vmatpush3.bf16.msra.mxu0 %v3411_v5 }
  0x9d   : > { %3228 = vmatprep.subr.bf16.mxu0 %v3687_v0 }
  0x9f   : > { %3219 = vmatmul.mubr.msk.bf16.vlgmr.msra.gmra.mxu0 %vm655_vm1, %v3985_v3 }
  0xa0   : > { %3230 = vmatprep.mubr.msk.bf16.mxu0 %vm3688_vm0, %v3687_v0 }
 0x157   : > { %v693_v7 = vpop.f32.mrf.mxu0 }
 0x158   : > { %v694_v8 = vadd.f32 %v3114_v6, %v693_v7 }
 0x159   : > { %v3204_v9 = vpop.f32.mrf.mxu0 }
 0x15a   : > { %769 = vrot.lane.b32.xlu1 %v694_v8, %s3689_s20  ;;  %763 = vrot.lane.b32.xlu0 %v694_v8, %s3690_s6 }
 0x15b   : > { %v696_v10 = vpop.f32.mrf.mxu0 }
 0x15d   : > { %v3205_v11 = vpop.f32.mrf.mxu0 }
 0x15e   : > { %766 = vrot.lane.b32.xlu0 %v694_v8, %s3691_s29 }
 0x15f   : > { %v991_v12 = vpop.f32.mrf.mxu0 }
 0x160   : > { %v992_v56 = vadd.f32 %v3122_v51, %v991_v12 }
 0x161   : > { %v3220_v13 = vpop.f32.mrf.mxu0 }
 0x162   : > { %v4023_v59 = vmul.f32 0.35355338, %v992_v56 }
 0x163   : > { %v994_v14 = vpop.f32.mrf.mxu0 }
 0x165   : > { %v3221_v15 = vpop.f32.mrf.mxu0 }
 0x1cc   : > { %v770_v23 = vpop.permute.xlu1 %769  ;;  %v764_v24 = vpop.permute.xlu0 %763 }
 0x1cd   : > { %v788_v27 = vcombine.low %v764_v24, %v770_v23  ;;  %v789_v28 = vcombine.high %v764_v24, %v770_v23 }
 0x1cf   : > { %v796_v33 = vrot.slane %v788_v27, %v4007_v26  ;;  %v803_v34 = vrot.slane %v789_v28, %v4007_v26  ;;  %v3694_v27 = vmov 0  }
 0x1d0   : > { %v767_v29 = vpop.permute.xlu0 %766 }
 0x1d1   : > { %v772_v30 = vcombine.low %v694_v8, %v767_v29  ;;  %v773_v31 = vcombine.high %v694_v8, %v767_v29 }
 0x1d3   : > { %v780_v35 = vrot.slane %v772_v30, %v4007_v26  ;;  %v787_v36 = vrot.slane %v773_v31, %v4007_v26 }
 0x1d5   : > { %v805_v37 = vcombine.high %v780_v35, %v796_v33  ;;  %v804_v38 = vcombine.low %v780_v35, %v796_v33  ;;  %v820_v39 = vcombine.low %v787_v36, %v803_v34  ;;  %v821_v42 = vcombine.high %v787_v36, %v803_v34 }
 0x1d7   : > { %v819_v40 = vrot.slane %v805_v37, %v4009_v32  ;;  %v812_v41 = vrot.slane %v804_v38, %v4009_v32  ;;  %v828_v45 = vrot.slane %v820_v39, %v4009_v32  ;;  %v835_v49 = vrot.slane %v821_v42, %v4009_v32 }
 0x1d9   : > { %v842_v43 = vpack.c.bf16 %v819_v40, %v819_v40  ;;  %v840_v44 = vpack.c.bf16 %v812_v41, %v812_v41  ;;  %v837_v46 = vcombine.high %v819_v40, %v3687_v0  ;;  %v844_v47 = vpack.c.bf16 %v828_v45, %v828_v45 }
 0x1da   : > { %v838_v50 = vcombine.high %v828_v45, %v3687_v0  ;;  %v846_v52 = vpack.c.bf16 %v835_v49, %v835_v49  ;;  %v839_v54 = vcombine.high %v835_v49, %v3687_v0  ;;  %v836_v55 = vcombine.high %v812_v41, %v3687_v0 }
 0x1db   : > { %1178 = vxpose.xlu0.c.b16.start.end [1/1] (short) (narrow) %v842_v43, 16  ;;  %1146 = vxpose.xlu1.c.b16.start.end [1/1] (short) (narrow) %v840_v44, 16  ;;  %v843_v48 = vpack.c.bf16 %v837_v46, %v837_v46 }
 0x1dc   : > { %v845_v53 = vpack.c.bf16 %v838_v50, %v838_v50  ;;  %v847_v57 = vpack.c.bf16 %v839_v54, %v839_v54  ;;  %v841_v58 = vpack.c.bf16 %v836_v55, %v836_v55 }
 0x1df   : > { %1210 = vxpose.xlu0.c.b16.start.end [1/1] (short) (narrow) %v844_v47, 16  ;;  %1194 = vxpose.xlu1.c.b16.start.end [1/1] (short) (narrow) %v843_v48, 16 }
 0x1e3   : > { %1242 = vxpose.xlu0.c.b16.start.end [1/1] (short) (narrow) %v846_v52, 16  ;;  %1226 = vxpose.xlu1.c.b16.start.end [1/1] (short) (narrow) %v845_v53, 16 }
 0x1e7   : > { %1258 = vxpose.xlu1.c.b16.start.end [1/1] (short) (narrow) %v847_v57, 16  ;;  %1162 = vxpose.xlu0.c.b16.start.end [1/1] (short) (narrow) %v841_v58, 16 }
 0x1eb   : > { %1002 = vrot.lane.b32.xlu1 %v4023_v59, %s3691_s29 }
 0x1ef   : > { %1005 = vrot.lane.b32.xlu1 %v4023_v59, %s3689_s20 }
 0x1f0   : > { %999 = vrot.lane.b32.xlu0 %v4023_v59, %s3690_s6 }
 0x23d   : > { %v1186_v62 = vpop.trf.xlu0  ;;  %v1154_v63 = vpop.trf.xlu1 }
 0x241   : > { %v1218_v1 = vpop.trf.xlu0  ;;  %v1202_v2 = vpop.trf.xlu1 }
 0x242   : > { %v1274_v6 = vcombine.low %v1154_v63, %v1218_v1 }
 0x244   : > { %v1281_v11 = vrot.slane %v1274_v6, %v4007_v26 }
 0x245   : > { %v1250_v4 = vpop.trf.xlu0  ;;  %v1234_v5 = vpop.trf.xlu1 }
 0x246   : > { %v1282_v7 = vcombine.low %v1186_v62, %v1250_v4 }
 0x248   : > { %v1289_v8 = vrot.slane %v1282_v7, %v4007_v26 }
 0x249   : > { %v1266_v9 = vpop.trf.xlu1  ;;  %v1170_v10 = vpop.trf.xlu0 }
 0x24a   : > { %v1316_v12 = vcombine.low %v1202_v2, %v1266_v9  ;;  %v1308_v13 = vcombine.low %v1170_v10, %v1234_v5  ;;  %v1290_v3 = vcombine.low %v1281_v11, %v1289_v8  ;;  %v1291_v14 = vcombine.high %v1281_v11, %v1289_v8  ;;  %v3118_v5 = vld [vmem:[#allocation8] ss:$0 sm:$0xff]  ;;  %v756_v9 = vpop.f32.mrf.mxu1 }
 0x24c   : > { %v1323_v15 = vrot.slane %v1316_v12, %v4007_v26  ;;  %v1315_v16 = vrot.slane %v1308_v13, %v4007_v26  ;;  %v1298_v19 = vrot.slane %v1290_v3, %v4009_v32  ;;  %v1305_v20 = vrot.slane %v1291_v14, %v4009_v32  ;;  %v3212_v3 = vpop.f32.mrf.mxu1 }
 0x24d   : > { %v4069_v13 = vadd.f32 %v3118_v5, %v756_v9 }
 0x24e   : > { %v1324_v17 = vcombine.low %v1315_v16, %v1323_v15  ;;  %v1325_v18 = vcombine.high %v1315_v16, %v1323_v15  ;;  %v1346_v29 = vshrl.u32 %v1298_v19, 16  ;;  %v1306_v30 = vcombine.high %v1298_v19, %v3694_v27 }
 0x24f   : > { %v1307_v36 = vcombine.high %v1305_v20, %v3694_v27  ;;  %v1362_v37 = vshrl.u32 %v1305_v20, 16 }
 0x250   : > { %v1332_v21 = vrot.slane %v1324_v17, %v4009_v32  ;;  %v1339_v22 = vrot.slane %v1325_v18, %v4009_v32  ;;  %v1354_v41 = vshrl.u32 %v1306_v30, 16  ;;  %v759_v18 = vpop.f32.mrf.mxu1 }
 0x251   : > { %v1370_v44 = vshrl.u32 %v1307_v36, 16 }
 0x252   : > { %v1360_v23 = vpack.i.b16 %v1339_v22, %v1305_v20  ;;  %v1344_v24 = vpack.i.b16 %v1332_v21, %v1298_v19  ;;  %v1347_v25 = vshrl.u32 %v1332_v21, 16  ;;  %v1340_v28 = vcombine.high %v1332_v21, %v3694_v27 }
 0x253   : > { %v1341_v34 = vcombine.high %v1339_v22, %v3694_v27  ;;  %v1363_v35 = vshrl.u32 %v1339_v22, 16  ;;  %v3213_v22 = vpop.f32.mrf.mxu1 }
 0x254   : > { %1438 = vxpose.xlu1.c.b16.start.end [1/1] (short) (narrow) %v1360_v23, 16  ;;  %1374 = vxpose.xlu0.c.b16.start.end [1/1] (short) (narrow) %v1344_v24, 16  ;;  %v1348_v31 = vpack.i.b16 %v1347_v25, %v1346_v29  ;;  %v1352_v33 = vpack.i.b16 %v1340_v28, %v1306_v30  ;;  %v1355_v40 = vshrl.u32 %v1340_v28, 16 }
 0x255   : > { %v1368_v38 = vpack.i.b16 %v1341_v34, %v1307_v36  ;;  %v1364_v39 = vpack.i.b16 %v1363_v35, %v1362_v37  ;;  %v1371_v43 = vshrl.u32 %v1341_v34, 16 }
 0x256   : > { %v1356_v42 = vpack.i.b16 %v1355_v40, %v1354_v41 }
 0x257   : > { %v1372_v45 = vpack.i.b16 %v1371_v43, %v1370_v44 }
 0x258   : > { %1390 = vxpose.xlu1.c.b16.start.end [1/1] (short) (narrow) %v1348_v31, 16  ;;  %1406 = vxpose.xlu0.c.b16.start.end [1/1] (short) (narrow) %v1352_v33, 16 }
 0x25c   : > { %1470 = vxpose.xlu1.c.b16.start.end [1/1] (short) (narrow) %v1368_v38, 16  ;;  %1454 = vxpose.xlu0.c.b16.start.end [1/1] (short) (narrow) %v1364_v39, 16 }
 0x25d   : > { %v1003_v46 = vpop.permute.xlu1 %1002 }
 0x25e   : > { %v1008_v51 = vcombine.low %v4023_v59, %v1003_v46  ;;  %v1009_v52 = vcombine.high %v4023_v59, %v1003_v46 }
 0x260   : > { %1422 = vxpose.xlu0.c.b16.start.end [1/1] (short) (narrow) %v1356_v42, 16  ;;  %v1016_v55 = vrot.slane %v1008_v51, %v4007_v26  ;;  %v1023_v56 = vrot.slane %v1009_v52, %v4007_v26  ;;  %849 = vrot.lane.b32.xlu1 %v4069_v13, %s3690_s6  ;;  %s4367_s6 = sld [smem:[#allocation31_spill]] }
 0x261   : > { %v1006_v47 = vpop.permute.xlu1 %1005 }
 0x262   : > { %v1000_v48 = vpop.permute.xlu0 %999 }
 0x263   : > { %v1024_v49 = vcombine.low %v1000_v48, %v1006_v47  ;;  %v1025_v50 = vcombine.high %v1000_v48, %v1006_v47 }
 0x264   : > { %1486 = vxpose.xlu0.c.b16.start.end [1/1] (short) (narrow) %v1372_v45, 16 }
 0x265   : > { %v1032_v53 = vrot.slane %v1024_v49, %v4007_v26  ;;  %v1039_v54 = vrot.slane %v1025_v50, %v4007_v26 }
 0x267   : > { %v1040_v57 = vcombine.low %v1016_v55, %v1032_v53  ;;  %v1041_v58 = vcombine.high %v1016_v55, %v1032_v53  ;;  %v1056_v60 = vcombine.low %v1023_v56, %v1039_v54  ;;  %v1057_v61 = vcombine.high %v1023_v56, %v1039_v54 }
 0x269   : > { %v1048_v1 = vrot.slane %v1040_v57, %v4009_v32  ;;  %v1055_v2 = vrot.slane %v1041_v58, %v4009_v32  ;;  %v1064_v59 = vrot.slane %v1056_v60, %v4009_v32  ;;  %v1071_v4 = vrot.slane %v1057_v61, %v4009_v32 }
 0x26b   : > { %v1072_v8 = vcombine.high %v1048_v1, %v3687_v0  ;;  %v1073_v10 = vcombine.high %v1055_v2, %v3687_v0  ;;  %v1074_v11 = vcombine.high %v1064_v59, %v3687_v0  ;;  %v1075_v12 = vcombine.high %v1071_v4, %v3687_v0 }
 0x26c   : > { %v3126_v23 = vpack.c.bf16 %v1064_v59, %v1048_v1  ;;  %v3127_v24 = vpack.c.bf16 %v1071_v4, %v1055_v2 }
 0x26d   : > { %v3128_v19 = vpack.c.bf16 %v1074_v11, %v1072_v8  ;;  %v3129_v20 = vpack.c.bf16 %v1075_v12, %v1073_v10 }
 0x26e   : > { %v1091_v34 = vrot.slane %v3126_v23, %v4007_v26  ;;  %v1099_v35 = vrot.slane %v3127_v24, %v4007_v26 }
 0x26f   : > { %v1116_v29 = vrot.slane %v3128_v19, %v4007_v26  ;;  %v1124_v30 = vrot.slane %v3129_v20, %v4007_v26 }
 0x270   : > { %v1100_v42 = vcombine.low %v1091_v34, %v1099_v35 }
 0x271   : > { %v1125_v38 = vcombine.low %v1116_v29, %v1124_v30 }
 0x272   : > { %v1107_v47 = vrot.slane %v1100_v42, %v4009_v32 }
 0x273   : > { %v1132_v44 = vrot.slane %v1125_v38, %v4009_v32 }
 0x274   : > { %v1137_v61 = vshrl.u32 %v1107_v47, 16  ;;  %v1108_v4 = vcombine.high %v1107_v47, %v3694_v27 }
 0x275   : > { %v1138_v52 = vshrl.u32 %v1132_v44, 16  ;;  %v1136_v60 = vpack.i.b16 %v1132_v44, %v1107_v47  ;;  %v1133_v2 = vcombine.high %v1132_v44, %v3694_v27 }
 0x277   : > { %v1139_v1 = vpack.i.b16 %v1138_v52, %v1137_v61  ;;  %v1144_v5 = vshrl.u32 %v1133_v2, 16 }
 0x2b6   : > { %v1446_v62 = vpop.trf.xlu1  ;;  %v1382_v63 = vpop.trf.xlu0 }
 0x2b7   : > { %v1502_v14 = vcombine.low %v1382_v63, %v1446_v62 }
 0x2b9   : > { %v1509_v25 = vrot.slane %v1502_v14, %v4007_v26 }
 0x2ba   : > { %v1398_v6 = vpop.trf.xlu1  ;;  %v1414_v7 = vpop.trf.xlu0 }
 0x2be   : > { %v1478_v15 = vpop.trf.xlu1  ;;  %v1462_v16 = vpop.trf.xlu0 }
 0x2bf   : > { %v1510_v17 = vcombine.low %v1414_v7, %v1478_v15  ;;  %v1527_v33 = vcombine.low %v1398_v6, %v1462_v16  ;;  %v1142_v6 = vpack.i.b16 %v1133_v2, %v1108_v4  ;;  %v1143_v7 = vshrl.u32 %v1108_v4, 16 }
 0x2c1   : > { %v1517_v21 = vrot.slane %v1510_v17, %v4007_v26  ;;  %v1534_v40 = vrot.slane %v1527_v33, %v4007_v26  ;;  %v1145_v8 = vpack.i.b16 %v1144_v5, %v1143_v7 }
 0x2c2   : > { %v1430_v28 = vpop.trf.xlu0 }
 0x2c3   : > { %v1518_v31 = vcombine.low %v1509_v25, %v1517_v21 }
 0x2c5   : > { %v1525_v39 = vrot.slane %v1518_v31, %v4009_v32 }
 0x2c6   : > { %v1494_v36 = vpop.trf.xlu0 }
 0x2c7   : > { %v1535_v37 = vcombine.low %v1430_v28, %v1494_v36  ;;  %v1526_v45 = vcombine.high %v1525_v39, %v3694_v27  ;;  %v1555_v49 = vshrl.u32 %v1525_v39, 16 }
 0x2c9   : > { %v1542_v41 = vrot.slane %v1535_v37, %v4007_v26  ;;  %v1561_v53 = vshrl.u32 %v1526_v45, 16 }
 0x2cb   : > { %v1543_v43 = vcombine.low %v1534_v40, %v1542_v41 }
 0x2cd   : > { %v1550_v46 = vrot.slane %v1543_v43, %v4009_v32 }
 0x2cf   : > { %v1554_v48 = vpack.i.b16 %v1550_v46, %v1525_v39  ;;  %v1556_v50 = vshrl.u32 %v1550_v46, 16  ;;  %v1551_v51 = vcombine.high %v1550_v46, %v3694_v27 }
 0x2d1   : > { %v1570_v54 = vsel %vm1568_vm2, %v1554_v48, 0  ;;  %v1557_v55 = vpack.i.b16 %v1556_v50, %v1555_v49  ;;  %v1560_v56 = vpack.i.b16 %v1551_v51, %v1526_v45  ;;  %v1562_v57 = vshrl.u32 %v1551_v51, 16 }
 0x2d2   : > { %3223 = vmatpush3.bf16.msra.mxu1 %v1570_v54  ;;  %v850_v31 = vpop.permute.xlu1 %849 }
 0x2d3   : > { %v1616_v58 = vsel %vm1568_vm2, %v1557_v55, 0  ;;  %3234 = vmatprep.subr.bf16.mxu1 %v3687_v0  ;;  %v1563_v62 = vpack.i.b16 %v1562_v57, %v1561_v53  ;;  %v1662_v63 = vsel %vm1568_vm2, %v1560_v56, 0 }
 0x2d4   : > { %3229 = vmatpush3.bf16.msra.mxu0 %v1616_v58 }
 0x2d5   : > { %3225 = vmatmul.mubr.msk.bf16.vlgmr.msra.gmra.mxu1 %vm1564_vm3, %v1136_v60  ;;  %3240 = vmatprep.subr.bf16.mxu0 %v3687_v0  ;;  %v1708_v59 = vsel %vm1568_vm2, %v1563_v62, 0 }
 0x2d6   : > { %3235 = vmatpush3.bf16.msra.mxu1 %v1662_v63  ;;  %3236 = vmatprep.mubr.msk.bf16.mxu1 %vm3688_vm0, %v3687_v0 }
 0x2d7   : > { %3231 = vmatmul.mubr.msk.bf16.vlgmr.msra.gmra.mxu0 %vm1564_vm3, %v1139_v1  ;;  %3246 = vmatprep.subr.bf16.mxu1 %v3687_v0 }
 0x2d8   : > { %3241 = vmatpush3.bf16.msra.mxu0 %v1708_v59  ;;  %3242 = vmatprep.mubr.msk.bf16.mxu0 %vm3688_vm0, %v3687_v0 }
 0x2d9   : > { %3252 = vmatprep.subr.bf16.mxu0 %v3687_v0 }
 0x2dd   : > { %3237 = vmatmul.mubr.msk.bf16.vlgmr.msra.gmra.mxu1 %vm1564_vm3, %v1142_v6 }
 0x2de   : > { %3248 = vmatprep.mubr.msk.bf16.mxu1 %vm3688_vm0, %v3687_v0 }
 0x2df   : > { %3243 = vmatmul.mubr.msk.bf16.vlgmr.msra.gmra.mxu0 %vm1564_vm3, %v1145_v8 }
 0x2e0   : > { %3254 = vmatprep.mubr.msk.bf16.mxu0 %vm3688_vm0, %v3687_v0 }
 0x395   : > { %v4109_v9 = vpop.f32.mrf.mxu1 }
 0x396   : > { %v1750_v10 = vsel %vm1564_vm3, %v4109_v9, -inf }
 0x397   : > { %1751 = vmax.xlane.f32.xlu1 %v1750_v10  ;;  %v3226_v11 = vpop.f32.mrf.mxu1  ;;  %v4113_v12 = vpop.f32.mrf.mxu0 }
 0x398   : > { %v1753_v3 = vsel %vm1564_vm3, %v4113_v12, -inf }
 0x399   : > { %v1609_v14 = vpop.f32.mrf.mxu1  ;;  %1754 = vmax.xlane.f32.xlu0 %v1753_v3  ;;  %v3232_v15 = vpop.f32.mrf.mxu0 }
 0x39b   : > { %v3227_v16 = vpop.f32.mrf.mxu1  ;;  %v1655_v17 = vpop.f32.mrf.mxu0 }
 0x39d   : > { %v3233_v18 = vpop.f32.mrf.mxu0  ;;  %v4117_v19 = vpop.f32.mrf.mxu1 }
 0x39e   : > { %v1756_v29 = vsel %vm1564_vm3, %v4117_v19, -inf }
 0x39f   : > { %v3238_v20 = vpop.f32.mrf.mxu1  ;;  %v4119_v21 = vpop.f32.mrf.mxu0 }
 0x3a0   : > { %v1759_v30 = vsel %vm1564_vm3, %v4119_v21, -inf }
 0x3a1   : > { %v1701_v22 = vpop.f32.mrf.mxu1  ;;  %v3244_v23 = vpop.f32.mrf.mxu0 }
 0x3a3   : > { %v3239_v24 = vpop.f32.mrf.mxu1  ;;  %v1747_v25 = vpop.f32.mrf.mxu0 }
 0x3a5   : > { %v3245_v28 = vpop.f32.mrf.mxu0 }
 0x3a8   : > { %855 = vrot.lane.b32.xlu1 %v4069_v13, %s3689_s20 }
 0x3af   : > { %852 = vrot.lane.b32.xlu0 %v4069_v13, %s3691_s29 }
 0x3cc   : > { %1757 = vmax.xlane.f32.xlu1 %v1756_v29 }
 0x3ce   : > { %1760 = vmax.xlane.f32.xlu0 %v1759_v30 }
 0x420   : > { %v4129_v33 = vpop.xlane.xlu1 %1751 }
 0x421   : > { %v1762_v29 = vsub.f32 %v4109_v9, %v4129_v33 }
 0x422   : > { %v4131_v34 = vpop.xlane.xlu0 %1754 }
 0x424   : > { %v856_v35 = vpop.permute.xlu1 %855 }
 0x425   : > { %v874_v36 = vcombine.low %v850_v31, %v856_v35  ;;  %v875_v37 = vcombine.high %v850_v31, %v856_v35  ;;  %v1763_v35 = vsub.f32 %v4113_v12, %v4131_v34 }
 0x426   : > { %v853_v38 = vpop.permute.xlu0 %852 }
 0x427   : > { %v858_v39 = vcombine.low %v4069_v13, %v853_v38  ;;  %v859_v40 = vcombine.high %v4069_v13, %v853_v38  ;;  %v882_v41 = vrot.slane %v874_v36, %v4007_v26  ;;  %v889_v43 = vrot.slane %v875_v37, %v4007_v26 }
 0x429   : > { %v866_v42 = vrot.slane %v858_v39, %v4007_v26  ;;  %v873_v44 = vrot.slane %v859_v40, %v4007_v26 }
 0x42b   : > { %v890_v45 = vcombine.low %v866_v42, %v882_v41  ;;  %v891_v46 = vcombine.high %v866_v42, %v882_v41  ;;  %v906_v47 = vcombine.low %v873_v44, %v889_v43  ;;  %v907_v50 = vcombine.high %v873_v44, %v889_v43 }
 0x42c   : > { %v1766_v42 = vmul.f32 1.442695, %v1762_v29 }
 0x42d   : > { %v898_v48 = vrot.slane %v890_v45, %v4009_v32  ;;  %v905_v49 = vrot.slane %v891_v46, %v4009_v32  ;;  %v914_v53 = vrot.slane %v906_v47, %v4009_v32  ;;  %v921_v57 = vrot.slane %v907_v50, %v4009_v32 }
 0x42e   : > { %v1768_v45 = vmul.f32 1.442695, %v1763_v35  ;;  %3422 = vpow2.f32 %v1766_v42 }
 0x42f   : > { %v926_v51 = vpack.c.bf16 %v898_v48, %v898_v48  ;;  %v922_v52 = vcombine.high %v898_v48, %v3687_v0  ;;  %v923_v13 = vcombine.high %v905_v49, %v3687_v0  ;;  %v924_v56 = vcombine.high %v914_v53, %v3687_v0 }
 0x430   : > { %v928_v58 = vpack.c.bf16 %v905_v49, %v905_v49  ;;  %v925_v61 = vcombine.high %v921_v57, %v3687_v0  ;;  %v930_v62 = vpack.c.bf16 %v914_v53, %v914_v53  ;;  %v932_v1 = vpack.c.bf16 %v921_v57, %v921_v57 }
 0x431   : > { %1798 = vxpose.xlu1.c.b16.start.end [1/1] (short) (narrow) %v926_v51, 16  ;;  %v927_v54 = vpack.c.bf16 %v922_v52, %v922_v52  ;;  %v929_v55 = vpack.c.bf16 %v923_v13, %v923_v13  ;;  %v931_v60 = vpack.c.bf16 %v924_v56, %v924_v56  ;;  %3424 = vpow2.f32 %v1768_v45 }
 0x432   : > { %v933_v63 = vpack.c.bf16 %v925_v61, %v925_v61 }
 0x433   : > { %1814 = vxpose.xlu0.c.b16.start.end [1/1] (short) (narrow) %v927_v54, 16 }
 0x435   : > { %1846 = vxpose.xlu1.c.b16.start.end [1/1] (short) (narrow) %v929_v55, 16 }
 0x437   : > { %1830 = vxpose.xlu0.c.b16.start.end [1/1] (short) (narrow) %v928_v58, 16 }
 0x439   : > { %1878 = vxpose.xlu1.c.b16.start.end [1/1] (short) (narrow) %v931_v60, 16 }
 0x43b   : > { %1862 = vxpose.xlu0.c.b16.start.end [1/1] (short) (narrow) %v930_v62, 16 }
 0x43d   : > { %1910 = vxpose.xlu1.c.b16.start.end [1/1] (short) (narrow) %v933_v63, 16 }
 0x43f   : > { %1894 = vxpose.xlu0.c.b16.start.end [1/1] (short) (narrow) %v932_v1, 16 }
 0x455   : > { %v1758_v2 = vpop.xlane.xlu1 %1757 }
 0x456   : > { %v1764_v43 = vsub.f32 %v4117_v19, %v1758_v2 }
 0x457   : > { %v1761_v59 = vpop.xlane.xlu0 %1760 }
 0x458   : > { %v1765_v46 = vsub.f32 %v4119_v21, %v1761_v59  ;;  %v1770_v48 = vmul.f32 1.442695, %v1764_v43  ;;  %v3423_v21 = vpop.eup %3422 }
 0x459   : > { %v3425_v53 = vpop.eup %3424  ;;  %v1774_v54 = vsel %vm1564_vm3, %v3423_v21, 0.0 }
 0x45a   : > { %v1772_v19 = vmul.f32 1.442695, %v1765_v46  ;;  %3426 = vpow2.f32 %v1770_v48  ;;  %v1777_v56 = vsel %vm1564_vm3, %v3425_v53, 0.0 }
 0x45c   : > { %3428 = vpow2.f32 %v1772_v19 }
 0x467   : > { %v3427_v55 = vpop.eup %3426 }
 0x468   : > { %v1780_v58 = vsel %vm1564_vm3, %v3427_v55, 0.0 }
 0x469   : > { %v3429_v57 = vpop.eup %3428 }
 0x46a   : > { %v1783_v60 = vsel %vm1564_vm3, %v3429_v57, 0.0 }
 0x493   : > { %v1806_v4 = vpop.trf.xlu1 }
 0x495   : > { %v1822_v5 = vpop.trf.xlu0 }
 0x497   : > { %v1854_v6 = vpop.trf.xlu1 }
 0x499   : > { %v1838_v7 = vpop.trf.xlu0 }
 0x49b   : > { %v1886_v8 = vpop.trf.xlu1 }
 0x49c   : > { %v1960_v11 = vcombine.low %v1822_v5, %v1886_v8 }
 0x49d   : > { %v1870_v10 = vpop.trf.xlu0 }
 0x49e   : > { %v1926_v14 = vcombine.low %v1806_v4, %v1870_v10  ;;  %v1967_v17 = vrot.slane %v1960_v11, %v4007_v26 }
 0x49f   : > { %v1918_v3 = vpop.trf.xlu1 }
 0x4a0   : > { %v1968_v15 = vcombine.low %v1854_v6, %v1918_v3  ;;  %v1933_v22 = vrot.slane %v1926_v14, %v4007_v26 }
 0x4a1   : > { %v1902_v16 = vpop.trf.xlu0 }
 0x4a2   : > { %v1975_v18 = vrot.slane %v1968_v15, %v4007_v26  ;;  %v1934_v20 = vcombine.low %v1838_v7, %v1902_v16 }
 0x4a4   : > { %v1976_v23 = vcombine.low %v1967_v17, %v1975_v18  ;;  %v1941_v24 = vrot.slane %v1934_v20, %v4007_v26  ;;  %v1977_v36 = vcombine.high %v1967_v17, %v1975_v18 }
 0x4a6   : > { %v1942_v25 = vcombine.low %v1933_v22, %v1941_v24  ;;  %v1984_v28 = vrot.slane %v1976_v23, %v4009_v32  ;;  %v1943_v30 = vcombine.high %v1933_v22, %v1941_v24  ;;  %v1991_v47 = vrot.slane %v1977_v36, %v4009_v32 }
 0x4a8   : > { %v1950_v31 = vrot.slane %v1942_v25, %v4009_v32  ;;  %v1999_v37 = vshrl.u32 %v1984_v28, 16  ;;  %v1992_v41 = vcombine.high %v1984_v28, %v3694_v27  ;;  %v1957_v33 = vrot.slane %v1943_v30, %v4009_v32 }
 0x4a9   : > { %v2015_v52 = vshrl.u32 %v1991_v47, 16  ;;  %v1993_v62 = vcombine.high %v1991_v47, %v3694_v27 }
 0x4aa   : > { %v1996_v38 = vpack.i.b16 %v1984_v28, %v1950_v31  ;;  %v1998_v39 = vshrl.u32 %v1950_v31, 16  ;;  %v1958_v40 = vcombine.high %v1950_v31, %v3694_v27  ;;  %v2007_v34 = vshrl.u32 %v1992_v41, 16 }
 0x4ab   : > { %v2014_v50 = vshrl.u32 %v1957_v33, 16  ;;  %v2012_v51 = vpack.i.b16 %v1991_v47, %v1957_v33  ;;  %v1959_v61 = vcombine.high %v1957_v33, %v3694_v27  ;;  %v2023_v2 = vshrl.u32 %v1993_v62, 16 }
 0x4ac   : > { %2026 = vxpose.xlu0.c.b16.start.end [1/1] (short) (narrow) %v1996_v38, 16  ;;  %v2000_v44 = vpack.i.b16 %v1999_v37, %v1998_v39  ;;  %v2006_v9 = vshrl.u32 %v1958_v40, 16  ;;  %v2004_v12 = vpack.i.b16 %v1992_v41, %v1958_v40 }
 0x4ad   : > { %v2016_v13 = vpack.i.b16 %v2015_v52, %v2014_v50  ;;  %v2022_v63 = vshrl.u32 %v1959_v61, 16  ;;  %v2020_v1 = vpack.i.b16 %v1993_v62, %v1959_v61 }
 0x4ae   : > { %2042 = vxpose.xlu1.c.b16.start.end [1/1] (short) (narrow) %v2000_v44, 16  ;;  %v2008_v49 = vpack.i.b16 %v2007_v34, %v2006_v9 }
 0x4af   : > { %v2024_v59 = vpack.i.b16 %v2023_v2, %v2022_v63 }
 0x4b0   : > { %2058 = vxpose.xlu0.c.b16.start.end [1/1] (short) (narrow) %v2004_v12, 16 }
 0x4b2   : > { %2074 = vxpose.xlu1.c.b16.start.end [1/1] (short) (narrow) %v2008_v49, 16 }
 0x4b4   : > { %2090 = vxpose.xlu0.c.b16.start.end [1/1] (short) (narrow) %v2012_v51, 16 }
 0x4b6   : > { %2106 = vxpose.xlu1.c.b16.start.end [1/1] (short) (narrow) %v2016_v13, 16 }
 0x4c1   : > { %1775 = vadd.xlane.f32.xlu0 %v1774_v54 }
 0x4c3   : > { %1778 = vadd.xlane.f32.xlu1 %v1777_v56 }
 0x4c5   : > { %1781 = vadd.xlane.f32.xlu0 %v1780_v58 }
 0x4c7   : > { %1784 = vadd.xlane.f32.xlu1 %v1783_v60 }
 0x4f2   : > { %2122 = vxpose.xlu0.c.b16.start.end [1/1] (short) (narrow) %v2020_v1, 16 }
 0x4f4   : > { %2138 = vxpose.xlu1.c.b16.start.end [1/1] (short) (narrow) %v2024_v59, 16 }
 0x50e   : > { %v2034_v4 = vpop.trf.xlu0 }
 0x510   : > { %v2050_v5 = vpop.trf.xlu1 }
 0x512   : > { %v2066_v6 = vpop.trf.xlu0 }
 0x514   : > { %v2082_v7 = vpop.trf.xlu1 }
 0x516   : > { %v2098_v8 = vpop.trf.xlu0 }
 0x517   : > { %v2154_v20 = vcombine.low %v2034_v4, %v2098_v8 }
 0x518   : > { %v2114_v10 = vpop.trf.xlu1 }
 0x519   : > { %v2179_v17 = vcombine.low %v2050_v5, %v2114_v10  ;;  %v2161_v35 = vrot.slane %v2154_v20, %v4007_v26 }
 0x51b   : > { %v2186_v28 = vrot.slane %v2179_v17, %v4007_v26 }
 0x54a   : > { %v1776_v11 = vpop.xlane.xlu0 %1775 }
 0x54b   : > { %3430 = vrcp.f32 %v1776_v11 }
 0x54c   : > { %v1779_v3 = vpop.xlane.xlu1 %1778 }
 0x54d   : > { %3432 = vrcp.f32 %v1779_v3 }
 0x54e   : > { %v1782_v14 = vpop.xlane.xlu0 %1781 }
 0x54f   : > { %3434 = vrcp.f32 %v1782_v14 }
 0x550   : > { %v1785_v15 = vpop.xlane.xlu1 %1784 }
 0x551   : > { %3436 = vrcp.f32 %v1785_v15 }
 0x554   : > { %v2130_v16 = vpop.trf.xlu0 }
 0x555   : > { %v2162_v18 = vcombine.low %v2066_v6, %v2130_v16 }
 0x556   : > { %v2146_v22 = vpop.trf.xlu1 }
 0x557   : > { %v2187_v23 = vcombine.low %v2082_v7, %v2146_v22  ;;  %v2169_v25 = vrot.slane %v2162_v18, %v4007_v26 }
 0x558   : > { %v3431_v24 = vpop.eup %3430 }
 0x559   : > { %v2194_v29 = vrot.slane %v2187_v23, %v4007_v26  ;;  %v1790_v30 = vmul.f32 %v3431_v24, %v3423_v21  ;;  %v2170_v40 = vcombine.low %v2161_v35, %v2169_v25 }
 0x55a   : > { %v3433_v31 = vpop.eup %3432 }
 0x55b   : > { %v2195_v36 = vcombine.low %v2186_v28, %v2194_v29  ;;  %v1794_v37 = vpack.c.bf16 %v1790_v30, %v1790_v30  ;;  %v1791_v38 = vmul.f32 %v3433_v31, %v3425_v53  ;;  %v2177_v33 = vrot.slane %v2170_v40, %v4009_v32  ;;  %v3414_v31 = vld [vmem:[#allocation10 + $0x8] sm:$0xff]  }
 0x55c   : > { %v3435_v39 = vpop.eup %3434 }
 0x55d   : > { %v2220_v41 = vsel %vm1564_vm3, %v1794_v37, 0  ;;  %v2202_v43 = vrot.slane %v2195_v36, %v4009_v32  ;;  %v1795_v44 = vpack.c.bf16 %v1791_v38, %v1791_v38  ;;  %v1792_v9 = vmul.f32 %v3435_v39, %v3427_v55 }
 0x55e   : > { %v3437_v42 = vpop.eup %3436  ;;  %3247 = vmatpush3.bf16.xpose.msra.mxu1 %v2220_v41  ;;  %v2207_v48 = vshrl.u32 %v2177_v33, 16  ;;  %v2178_v52 = vcombine.high %v2177_v33, %v3694_v27 }
 0x55f   : > { %3258 = vmatprep.subr.bf16.mxu1 %v3687_v0  ;;  %v2266_v45 = vsel %vm1564_vm3, %v1795_v44, 0  ;;  %v1793_v46 = vmul.f32 %v3437_v42, %v3429_v57  ;;  %v1796_v12 = vpack.c.bf16 %v1792_v9, %v1792_v9  ;;  %v2208_v34 = vshrl.u32 %v2202_v43, 16 }
 0x560   : > { %3253 = vmatpush3.bf16.xpose.msra.mxu0 %v2266_v45  ;;  %v2206_v47 = vpack.i.b16 %v2202_v43, %v2177_v33  ;;  %v2203_v19 = vcombine.high %v2202_v43, %v3694_v27  ;;  %v2213_v54 = vshrl.u32 %v2178_v52, 16  ;;  %v3415_v43 = vld [vmem:[#allocation10] sm:$0xff]  }
 0x561   : > { %3264 = vmatprep.subr.bf16.mxu0 %v3687_v0  ;;  %v1797_v49 = vpack.c.bf16 %v1793_v46, %v1793_v46  ;;  %v2312_v50 = vsel %vm1564_vm3, %v1796_v12, 0  ;;  %v2209_v51 = vpack.i.b16 %v2208_v34, %v2207_v48 }
 0x562   : > { %v2214_v21 = vshrl.u32 %v2203_v19, 16  ;;  %v2212_v53 = vpack.i.b16 %v2203_v19, %v2178_v52 }
 0x563   : > { %v2358_v13 = vsel %vm1564_vm3, %v1797_v49, 0 }
 0x564   : > { %v2215_v55 = vpack.i.b16 %v2214_v21, %v2213_v54 }
 0x565   : > { %3249 = vmatmul.mubr.msk.bf16.vlgmr.msra.gmra.mxu1 %vm1564_vm3, %v2206_v47 }
 0x566   : > { %3259 = vmatpush3.bf16.xpose.msra.mxu1 %v2312_v50  ;;  %3260 = vmatprep.mubr.msk.bf16.mxu1 %vm3688_vm0, %v3687_v0 }
 0x567   : > { %3270 = vmatprep.subr.bf16.mxu1 %v3687_v0  ;;  %3255 = vmatmul.mubr.msk.bf16.vlgmr.msra.gmra.mxu0 %vm1564_vm3, %v2209_v51 }
 0x568   : > { %3265 = vmatpush3.bf16.xpose.msra.mxu0 %v2358_v13  ;;  %3266 = vmatprep.mubr.msk.bf16.mxu0 %vm3688_vm0, %v3687_v0 }
 0x569   : > { %3278 = vmatprep.subr.bf16.mxu0 %v3687_v0 }
 0x56d   : > { %3261 = vmatmul.mubr.msk.bf16.vlgmr.msra.gmra.mxu1 %vm1564_vm3, %v2212_v53 }
 0x56e   : > { %3274 = vmatprep.mubr.msk.bf16.mxu1 %vm3688_vm0, %v3687_v0  ;;  %3271 = vmatpush3.bf16.msra.mxu1 %v3414_v31  ;;  %v3421_v31 = vld [vmem:[%s4313_s11] sm:$0xff]  }
 0x56f   : > { %3267 = vmatmul.mubr.msk.bf16.vlgmr.msra.gmra.mxu0 %vm1564_vm3, %v2215_v55  ;;  %3272 = vmatprep.subr.bf16.mxu1 %v3687_v0 }
 0x570   : > { %3282 = vmatprep.mubr.msk.bf16.mxu0 %vm3688_vm0, %v3687_v0 }
 0x572   : > { %3273 = vmatpush3.bf16.msra.mxu1 %v3415_v43 }
 0x573   : > { %3286 = vmatprep.subr.bf16.mxu1 %v3687_v0 }
 0x625   : > { %v2256_v27 = vpop.f32.mrf.mxu1 }
 0x626   : > { %2400 = vxpose.xlu0.b32.start.end [1/1] (short) (narrow) %v2256_v27, 8 }
 0x627   : > { %v3250_v56 = vpop.f32.mrf.mxu1  ;;  %v2302_v57 = vpop.f32.mrf.mxu0 }
 0x628   : > { %2432 = vxpose.xlu1.b32.start.end [1/1] (short) (narrow) %v2302_v57, 8  ;;  %v3140_v57 = vld [vmem:[#allocation11] ss:$0 sm:$0xff] }
 0x629   : > { %v2259_v58 = vpop.f32.mrf.mxu1  ;;  %v3256_v60 = vpop.f32.mrf.mxu0 }
 0x62a   : > { %v3442_v58 = vld [vmem:[%s3953_s27] sm:$0xf] }
 0x62b   : > { %v3251_v61 = vpop.f32.mrf.mxu1  ;;  %v2305_v62 = vpop.f32.mrf.mxu0  ;;  %v631_v60 = vunpack.c.l.bf16 %v3442_v58 }
 0x62d   : > { %v2348_v63 = vpop.f32.mrf.mxu1  ;;  %v3257_v1 = vpop.f32.mrf.mxu0 }
 0x62e   : > { %2464 = vxpose.xlu0.b32.start.end [1/1] (short) (narrow) %v2348_v63, 8 }
 0x62f   : > { %v3262_v2 = vpop.f32.mrf.mxu1  ;;  %v2394_v59 = vpop.f32.mrf.mxu0 }
 0x631   : > { %v2351_v4 = vpop.f32.mrf.mxu1  ;;  %v3268_v5 = vpop.f32.mrf.mxu0 }
 0x632   : > { %2496 = vxpose.xlu0.b32.start.end [1/1] (short) (narrow) %v2394_v59, 8 }
 0x633   : > { %v3263_v6 = vpop.f32.mrf.mxu1  ;;  %v2397_v7 = vpop.f32.mrf.mxu0 }
 0x635   : > { %v3269_v8 = vpop.f32.mrf.mxu0 }
 0x6a2   : > { %v2416_v10 = vpop.trf.xlu0 }
 0x6a4   : > { %v2448_v3 = vpop.trf.xlu1 }
 0x6aa   : > { %v2480_v11 = vpop.trf.xlu0 }
 0x6ab   : > { %v2528_v14 = vcombine.low %v2416_v10, %v2480_v11  ;;  %v2529_v15 = vcombine.high %v2416_v10, %v2480_v11  ;;  %v3416_v11 = vld [vmem:[%s4311_s9 + $0x8] sm:$0xff]  }
 0x6ac   : > { %3279 = vmatpush3.bf16.msra.mxu0 %v3416_v11 }
 0x6ad   : > { %v2536_v20 = vrot.slane %v2528_v14, %v4007_v26  ;;  %v2543_v22 = vrot.slane %v2529_v15, %v4007_v26  ;;  %3280 = vmatprep.subr.bf16.mxu0 %v3687_v0  ;;  %v3418_v14 = vld [vmem:[%s4313_s11 + $0x18] sm:$0xff]   ;;  %v3419_v15 = vld [vmem:[%s4313_s11 + $0x10] sm:$0xff]  }
 0x6ae   : > { %v2512_v16 = vpop.trf.xlu0 }
 0x6af   : > { %v2544_v17 = vcombine.low %v2448_v3, %v2512_v16  ;;  %v2545_v18 = vcombine.high %v2448_v3, %v2512_v16  ;;  %v3417_v3 = vld [vmem:[%s4311_s9] sm:$0xff]  }
 0x6b0   : > { %3281 = vmatpush3.bf16.msra.mxu0 %v3417_v3 }
 0x6b1   : > { %v2552_v23 = vrot.slane %v2544_v17, %v4007_v26  ;;  %v2559_v24 = vrot.slane %v2545_v18, %v4007_v26 }
 0x6b3   : > { %v2560_v25 = vcombine.low %v2536_v20, %v2552_v23  ;;  %v2561_v28 = vcombine.high %v2536_v20, %v2552_v23  ;;  %v2576_v29 = vcombine.low %v2543_v22, %v2559_v24  ;;  %v2577_v30 = vcombine.high %v2543_v22, %v2559_v24  ;;  %v3144_v22 = vld [vmem:[%s4315_s13] ss:$0 sm:$0xff] }
 0x6b4   : > { %v3145_v24 = vld [vmem:[%s4316_s14] ss:$0 sm:$0xff] }
 0x6b5   : > { %v2568_v35 = vrot.slane %v2560_v25, %v4009_v32  ;;  %v2575_v36 = vrot.slane %v2561_v28, %v4009_v32  ;;  %v2584_v37 = vrot.slane %v2576_v29, %v4009_v32  ;;  %v2591_v38 = vrot.slane %v2577_v30, %v4009_v32  ;;  %v3420_v30 = vld [vmem:[%s4313_s11 + $0x8] sm:$0xff]  }
 0x6b7   : > { %v2596_v39 = vcombine.low %v2568_v35, %v2575_v36  ;;  %v3138_v40 = vcombine.high %v2568_v35, %v2575_v36  ;;  %v2612_v41 = vcombine.low %v2584_v37, %v2591_v38  ;;  %v3139_v42 = vcombine.high %v2584_v37, %v2591_v38  ;;  %v3146_v35 = vld [vmem:[%s4312_s10] ss:$0 sm:$0xff] }
 0x6b9   : > { %v2603_v44 = vrot.slane %v2596_v39, %v4007_v26  ;;  %v2611_v9 = vrot.slane %v3138_v40, %v4007_v26  ;;  %v2619_v33 = vrot.slane %v2612_v41, %v4007_v26  ;;  %v2627_v45 = vrot.slane %v3139_v42, %v4007_v26 }
 0x6bb   : > { %v2629_v46 = vcombine.high %v2603_v44, %v2611_v9  ;;  %v2645_v12 = vcombine.high %v2619_v33, %v2627_v45  ;;  %v2628_v34 = vcombine.low %v2603_v44, %v2611_v9  ;;  %v2644_v47 = vcombine.low %v2619_v33, %v2627_v45 }
 0x6bd   : > { %v2643_v48 = vrot.slane %v2629_v46, %v4009_v32  ;;  %v2659_v49 = vrot.slane %v2645_v12, %v4009_v32  ;;  %v2636_v50 = vrot.slane %v2628_v34, %v4009_v32  ;;  %v2652_v19 = vrot.slane %v2644_v47, %v4009_v32 }
 0x6bf   : > { %v2662_v51 = vcombine.low %v2643_v48, %v2659_v49  ;;  %v2661_v52 = vcombine.high %v2636_v50, %v2652_v19  ;;  %v2660_v13 = vcombine.low %v2636_v50, %v2652_v19  ;;  %v2663_v26 = vcombine.high %v2643_v48, %v2659_v49 }
 0x6c1   : > { %2669 = vrot.lane.b32.xlu0 %v2662_v51, %s3695_s17  ;;  %2665 = vrot.lane.b32.xlu1 %v2661_v52, %s3696_s4  ;;  %s4366_s4 = sld [smem:[#allocation30_spill]] }
 0x6c5   : > { %2673 = vrot.lane.b32.xlu1 %v2663_v26, %s3697_s23  ;;  %v3156_v26 = vld [vmem:[%s4317_s15] ss:$0 sm:$0xff]  ;;  %s3159_s23 = sshll.u32 %s3810_s0, 6  ;;  %s3605_s0 = sshll.u32 %s3698_s8, 4  ;;  %s3606_s0 = int_to_ptr.vmem [resolvable:$false] %s3605_s0 }
 0x6c6   : > { %s2976_s29 = scalar_lea.hbm %s4367_s6, %s3159_s23  ;;  %s3607_s28 = scalar_lea.vmem %s3606_s0, 128 }
 0x6c7   : > { %p3608_p7 = scmp.lt.s32.totalorder %s2979_s19, %s3606_s0  ;;  %p3609_p5 = scmp.lt.s32.totalorder %s3607_s28, %s3601_s7 }
 0x6c9   : > { %p3610_p2 = por %p3609_p5, %p3608_p7 }
 0x6cb   : > { %p3611_p1 = pnand %p3610_p2, %p3604_p11 }
 0x733   : > { %v2666_v21 = vpop.permute.xlu1 %2665  ;;  %v2670_v53 = vpop.permute.xlu0 %2669 }
 0x734   : > { %v2676_v54 = vsel %vm1564_vm3, %v2660_v13, %v2666_v21 }
 0x735   : > { %v2678_v27 = vsel %vm2677_vm4, %v2676_v54, %v2670_v53  ;;  %v3157_v53 = vld [vmem:[%s4366_s4] ss:$0 sm:$0xff] }
 0x737   : > { %v2674_v55 = vpop.permute.xlu1 %2673 }
 0x738   : > { %v2680_v32 = vsel %vm2679_vm5, %v2678_v27, %v2674_v55 }
 0x739   : > { %v2686_v56 = vpack.c.bf16 %v2680_v32, %v2680_v32 }
 0x73b   : > { %3275 = vmatmul.mubr.msk.bf16.vlgmr.msra.gmra.mxu1 %vm655_vm1, %v2686_v56 }
 0x73c   : > { %3294 = vmatprep.mubr.msk.bf16.mxu1 %vm3688_vm0, %v3687_v0  ;;  %3287 = vmatpush3.bf16.msra.mxu1 %v3418_v14 }
 0x73d   : > { %3288 = vmatprep.subr.bf16.mxu1 %v3687_v0 }
 0x740   : > { %3289 = vmatpush3.bf16.msra.mxu1 %v3419_v15 }
 0x741   : > { %3290 = vmatprep.subr.bf16.mxu1 %v3687_v0 }
 0x744   : > { %3291 = vmatpush3.bf16.msra.mxu1 %v3420_v30 }
 0x745   : > { %3292 = vmatprep.subr.bf16.mxu1 %v3687_v0  ;;  %v3150_v0 = vld [vmem:[%s4314_s12] ss:$0 sm:$0xff] }
 0x748   : > { %3293 = vmatpush3.bf16.msra.mxu1 %v3421_v31 }
 0x7fb   : > { %v2742_v61 = vpop.f32.mrf.mxu1 }
 0x7fc   : > { %v2743_v62 = vadd.f32 %v3140_v57, %v2742_v61 }
 0x7fd   : > { %v3276_v63 = vpop.f32.mrf.mxu1 }
 0x7fe   : > { %v2748_v1 = vadd.f32 %v2743_v62, %v631_v60 }
 0x7ff   : > { %v2745_v2 = vpop.f32.mrf.mxu1 }
 0x800   : > { %v2749_v59 = vsel %vm655_vm1, %v2748_v1, 0.0 }
 0x801   : > { %v3277_v4 = vpop.f32.mrf.mxu1  ;;  %2750 = vadd.xlane.f32.xlu1 %v2749_v59 }
 0x88a   : > { %v2751_v5 = vpop.xlane.xlu1 %2750 }
 0x88b   : > { %v2753_v6 = vmul.f32 0.03125, %v2751_v5 }
 0x88d   : > { %v2754_v7 = vsub.f32 %v2748_v1, %v2753_v6 }
 0x88f   : > { %v2755_v8 = vmul.f32 %v2754_v7, %v2754_v7 }
 0x891   : > { %v2756_v10 = vsel %vm655_vm1, %v2755_v8, 0.0 }
 0x892   : > { %2757 = vadd.xlane.f32.xlu0 %v2756_v10 }
 0x91b   : > { %v2758_v16 = vpop.xlane.xlu0 %2757 }
 0x91c   : > { %v2759_v17 = vmul.f32 0.03125, %v2758_v16 }
 0x91e   : > { %v2760_v18 = vadd.f32 1e-05, %v2759_v17 }
 0x920   : > { %3438 = vrsqrt.f32 %v2760_v18 }
 0x92d   : > { %v3439_v20 = vpop.eup %3438 }
 0x92e   : > { %v2762_v23 = vmul.f32 %v3439_v20, %v2754_v7 }
 0x930   : > { %v2770_v25 = vmul.f32 %v3144_v22, %v2762_v23 }
 0x932   : > { %v2778_v28 = vadd.f32 %v3145_v24, %v2770_v25 }
 0x934   : > { %v2779_v29 = vpack.c.bf16 %v2778_v28, %v2778_v28 }
 0x936   : > { %3283 = vmatmul.mubr.msk.bf16.vlgmr.msra.gmra.mxu0 %vm655_vm1, %v2779_v29 }
 0x9f6   : > { %v2840_v36 = vpop.f32.mrf.mxu0 }
 0x9f7   : > { %v2841_v37 = vadd.f32 %v3146_v35, %v2840_v36 }
 0x9f8   : > { %v3284_v38 = vpop.f32.mrf.mxu0 }
 0x9f9   : > { %v2846_v39 = vmax.f32 %v2841_v37, 0.0 }
 0x9fa   : > { %v2843_v40 = vpop.f32.mrf.mxu0 }
 0x9fb   : > { %v2847_v41 = vpack.c.bf16 %v2846_v39, %v2846_v39 }
 0x9fc   : > { %v3285_v42 = vpop.f32.mrf.mxu0 }
 0x9fd   : > { %3295 = vmatmul.mubr.msk.bf16.vlgmr.msra.gmra.mxu1 %vm2887_vm6, %v2847_v41 }
 0xabd   : > { %v2925_v43 = vpop.f32.mrf.mxu1 }
 0xabe   : > { %v2926_v44 = vadd.f32 %v3150_v0, %v2925_v43 }
 0xabf   : > { %v3296_v9 = vpop.f32.mrf.mxu1 }
 0xac0   : > { %v2931_v33 = vadd.f32 %v2926_v44, %v2778_v28 }
 0xac1   : > { %v2928_v45 = vpop.f32.mrf.mxu1 }
 0xac2   : > { %v2932_v46 = vsel %vm655_vm1, %v2931_v33, 0.0 }
 0xac3   : > { %2933 = vadd.xlane.f32.xlu1 %v2932_v46  ;;  %v3297_v12 = vpop.f32.mrf.mxu1 }
 0xb4c   : > { %v2934_v34 = vpop.xlane.xlu1 %2933 }
 0xb4d   : > { %v2935_v47 = vmul.f32 0.03125, %v2934_v34 }
 0xb4f   : > { %v2936_v48 = vsub.f32 %v2931_v33, %v2935_v47 }
 0xb51   : > { %v2937_v49 = vmul.f32 %v2936_v48, %v2936_v48 }
 0xb53   : > { %v2938_v50 = vsel %vm655_vm1, %v2937_v49, 0.0 }
 0xb54   : > { %2939 = vadd.xlane.f32.xlu0 %v2938_v50 }
 0xbdd   : > { %v2940_v19 = vpop.xlane.xlu0 %2939 }
 0xbde   : > { %v2941_v51 = vmul.f32 0.03125, %v2940_v19 }
 0xbe0   : > { %v2942_v52 = vadd.f32 1e-05, %v2941_v51 }
 0xbe2   : > { %3440 = vrsqrt.f32 %v2942_v52 }
 0xbef   : > { %v3441_v13 = vpop.eup %3440 }
 0xbf0   : > { %v2944_v21 = vmul.f32 %v3441_v13, %v2936_v48 }
 0xbf2   : > { %v2952_v54 = vmul.f32 %v3156_v26, %v2944_v21 }
 0xbf4   : > { %v2960_v55 = vadd.f32 %v3157_v53, %v2952_v54 }
 0xbf6   : > { %v2961_v27 = vpack.c.bf16 %v2960_v55, %v2960_v55 }
 0xbf8   : > { %2963 = vst.msk [vmem:[%s628_s18] sm:$0xf] %vm2962_vm7, %v2961_v27 }
 0xbf9   : > { %3614 = shalt.err (!%p3611_p1)
}
 0xbfa   : > { %s3615_s30 = scalar_lea.hbm %s2976_s29, 64  ;;  %s3619_s4 = scalar_lea.hbm %s4367_s6, 128 }
 0xbfb   : > { %p3616_p3 = scmp.ne.s32.totalorder %s2976_s29, %s3615_s30  ;;  %p3620_p12 = scmp.lt.s32.totalorder %s2976_s29, %s4367_s6 }
 0xbfc   : > { %p3621_p13 = scmp.lt.s32.totalorder %s3619_s4, %s3615_s30 }
 0xbfd   : > { %p3617_p10 = pnand %p3616_p3, %p4368_p9 }
 0xbfe   : > { %p3622_p0 = por %p3621_p13, %p3620_p12 }
 0xbff   : > { %p3618_p6 = pneg %p3617_p10 }
 0xc01   : > { %p3623_p8 = pnand %p3622_p0, %p3618_p6 }
 0xc03   : > { %3626 = shalt.err (!%p3623_p8)
}
 0xc04   : > { %3320 = dma.vmem_to_hbm [thread:$0]  (%p4368_p9), %s2979_s19, 64, %s2976_s29, %s2965_s21  }
 0xc05 PF: > { %s4369_s27 = sld [smem:[#allocation20_spill]]  ;;  %s2990_s20 = sand.u32 1, %s3665_s24  }
 0xc06   : > { %p4370_p4 = scmp.ne.s32.totalorder %s4354_s16, 0  ;;  %s2991_s7 = scalar_lea.sflag [#allocation4], %s2990_s20 }
 0xc0b   : > { %p4371_p11 = scmp.ge.s32.totalorder %s4369_s27, 2 }
 0xc0d   : > { %p3343_p7 = pnand %p4371_p11, %p4370_p4 }
 0xc0f   : > { %p3344_p5 = pneg %p3343_p7 }
 0xc11   : > { %3660 = dma.done.wait (%p3344_p5), %s2991_s7, 64  }
 0xc12   : > { %3662 = vsyncadd (%p3344_p5), %s2991_s7, 4294967232  ;;  %s4372_s27 = sld [smem:[#allocation21_spill]]  ;;  %s4375_s24 = smov %s3669_s25 }
 0xc13   : > { %s4373_s8 = sld [smem:[#allocation19_spill]] }
 0xc14   : > { %s4374_s26 = sld [smem:[#allocation22_spill]] }
 0xc18   : > { %p33_p2 = scmp.ge.s32.totalorder %s4372_s27, 4  }
 0xc19   : > { %s4376_s25 = smov %s4373_s8 }
 0xc1a   :  { %35 = sbr.rel (!%p33_p2) target bundleno = 18 (0x12), region = 153 }
 0xc1f   :  { %2996 = vsyncpa [#allocation3], 1 }
 0xc20   :  { %2998 = vsyncpa [#allocation3 + $0x1], 1 }
 0xc21   :  { %2999 = vsyncpa [#allocation6], 1 }
 0xc22   :  { %3000 = vsyncpa [#allocation9], 1 }
 0xc23   :  { %3001 = vsyncpa [#allocation12], 1 }
 0xc24   :  { %3002 = vsyncpa [#allocation4], 1 }
 0xc25   :  { %3004 = vsyncpa [#allocation4 + $0x1], 1 }

</bundles_post_ra>
